<compile_context>
chip_gen: v7x
topology: tpu7x:2x2x1
jax: 0.10.0
libtpu: 0.0.40
codegen_flags: <defaults>
</compile_context>

<pallas_src>
import functools

import jax
import jax.numpy as jnp
from jax import lax
from jax.experimental import pallas as pl
from jax.experimental.pallas import tpu as pltpu

BN_EPS = 1e-5
NEG_SENTINEL = -1e30   # finite fill for max-pool masking (no -inf rows)


# ----------------------------- fused Pallas kernel ---------------------------

def _fused_gnn_kernel(x_ref, a_ref, pmean_ref, valid_ref, starts_ref, counts_ref,
                      enc_w_ref, enc_b_ref, *rest,
                      num_layer, inv_n, n_pad, seg_pad, g_pad, matmul_dtype):
    """Encoder -> num_layer x (GIN + BN [+ ReLU]) -> mean/max pool, all on-chip.

    rest = (w1, b1, w2, b2, gamma, beta) * num_layer, out_ref, h_scratch
    """
    layer_refs = rest[:6 * num_layer]
    out_ref = rest[6 * num_layer]
    h_scr = rest[6 * num_layer + 1]

    valid = valid_ref[...]                               # [N_pad, 1] in {0, 1}

    # ---- node encoder: Linear(2, D).  K=2 contraction -> VPU broadcast-FMA,
    # not an MXU matmul (a depth-2 systolic pass would be wasted).
    x = x_ref[...]                                       # [N_pad, 2] f32
    w_enc = enc_w_ref[...]                               # [2, D] f32
    h = (x[:, 0:1] * w_enc[0:1, :]
         + x[:, 1:2] * w_enc[1:2, :]
         + enc_b_ref[...])                               # [N_pad, D] f32

    a_hat = a_ref[...].astype(matmul_dtype)              # [N_pad, N_pad] = A + I (bf16 storage)

    # ---- GIN layers (static unroll; h stays resident on-chip) ----
    # TODO(synk): stack weights into [L, D, D] + lax.fori_loop for deep configs.
    for layer in range(num_layer):
        w1 = layer_refs[6 * layer + 0][...]
        b1 = layer_refs[6 * layer + 1][...]
        w2 = layer_refs[6 * layer + 2][...]
        b2 = layer_refs[6 * layer + 3][...]
        gamma = layer_refs[6 * layer + 4][...]
        beta = layer_refs[6 * layer + 5][...]

        # GIN aggregation, eps = 0:  (A + I) @ h  ==  h_i + sum_{j in N(i)} h_j
        agg = jnp.dot(a_hat, h.astype(matmul_dtype),
                      preferred_element_type=jnp.float32)
        # MLP: Linear -> ReLU -> Linear (f32 accumulation on the MXU)
        z = jnp.dot(agg.astype(matmul_dtype), w1,
                    preferred_element_type=jnp.float32) + b1
        z = jnp.maximum(z, 0.0)
        z = jnp.dot(z.astype(matmul_dtype), w2,
                    preferred_element_type=jnp.float32) + b2

        # BatchNorm1d (training-mode batch stats), two-pass variance,
        # padded rows excluded via `valid`; inv_n = 1 / (#real nodes).
        mean = jnp.sum(z * valid, axis=0, keepdims=True) * inv_n
        dz = (z - mean) * valid
        var = jnp.sum(dz * dz, axis=0, keepdims=True) * inv_n
        scale = gamma * lax.rsqrt(var + BN_EPS)
        shift = beta - mean * scale
        z = z * scale + shift
        if layer != num_layer - 1:
            z = jnp.maximum(z, 0.0)
        h = z

    # Final node embeddings kept in a VMEM scratch so the max pool can take
    # dynamic per-graph row slices of it.
    h_scr[...] = h

    # ---- global_mean_pool: row-normalized assignment matrix @ h on the MXU.
    mean_pool = jnp.dot(pmean_ref[...], h.astype(pmean_ref.dtype),
                        preferred_element_type=jnp.float32)        # [G_pad, D]

    # ---- global_max_pool: single pass over contiguous per-graph segments
    # (batch is sorted as produced by PyG batching).  O(G * seg_pad * D)
    # ~= O(N * D) total instead of the O(G * N * D) full-mask broadcast.
    max_rows = []
    for g in range(g_pad):
        start = starts_ref[g]
        count = counts_ref[g]
        start_c = jnp.maximum(0, jnp.minimum(start, n_pad - seg_pad))
        seg = h_scr[pl.ds(start_c, seg_pad), :]                    # [seg_pad, D]
        row = start_c + lax.broadcasted_iota(jnp.int32, seg.shape, 0)
        m = (row >= start) & (row < start + count)
        max_rows.append(jnp.max(jnp.where(m, seg, NEG_SENTINEL),
                                axis=0, keepdims=True))            # [1, D]
    max_pool = jnp.concatenate(max_rows, axis=0)                   # [G_pad, D]

    # Single lane-dense [G_pad, 2D] store: [mean | max].
    out_ref[...] = jnp.concatenate([mean_pool, max_pool], axis=1)


# ------------------------------ wrapper ---------------------------------------

def _vmem_limit_bytes(n_pad, g_pad, emb, input_dim, num_layer):
    est = 0
    est += n_pad * n_pad * 2                                  # A_hat (bf16)
    est += g_pad * n_pad * 4                                  # pmean
    est += n_pad * 128 * 4 * 2                                # x (lane-padded) + valid
    est += num_layer * ((input_dim * emb + emb * emb) * 4 + 4 * emb * 4)
    est += 2 * n_pad * max(emb, input_dim) * 4                # h scratch + transients
    est += g_pad * 2 * emb * 4                                # fused output
    # x2 for double buffering + headroom; cap at 48 MiB so the same setting is
    # safe on v7x (64 MiB physical VMEM).
    # TODO(synk): raise toward ~100 MiB on v5e/v6e for large N, and switch to
    # a tiled/streamed A_hat before 2*N_pad^2 bytes approaches this cap.
    return int(min(48 << 20, max(16 << 20, 2 * est + (4 << 20))))


def gnn_forward(node_type, num_inv_pred, edge_index, batch, params, num_graphs,
                *, matmul_dtype=jnp.bfloat16):
    """Fused forward pass.

    matmul_dtype=bf16 (default) drives the native bf16 MXU path on v5e/v6e/v7x
    with f32 accumulation.  A_hat is always stored in bf16 (exact: small
    integer edge counts).  Pass jnp.float32 for a near-reference-exact path.
    """
    n = int(node_type.shape[0])
    num_layer = len(params["layers"])
    input_dim = params["layers"][0]["w1"].shape[0]
    emb_dim = params["layers"][-1]["w2"].shape[1]

    n_pad = max(128, -(-n // 128) * 128)            # full MXU rows
    g_pad = max(8, -(-num_graphs // 8) * 8)         # sublane-aligned graph count

    # x = cat([node_type, num_inverted_predecessors], dim=1)  -> [N_pad, 2]
    x = jnp.stack([node_type, num_inv_pred], axis=1).astype(jnp.float32)
    x = jnp.pad(x, ((0, n_pad - n), (0, 0)))

    # A_hat = A + I built MXU-friendly (no serialized scatter), stored in bf16.
    # TODO(synk): cache A_hat across calls / stream a COO aggregation with
    # scalar-prefetched edge indices for large sparse graphs.
    src, dst = edge_index[0], edge_index[1]
    oh_src = jax.nn.one_hot(src, n_pad, dtype=jnp.float32)          # [E, N_pad]
    oh_dst = jax.nn.one_hot(dst, n_pad, dtype=jnp.float32)          # [E, N_pad]
    a_hat = (jnp.dot(oh_dst.T, oh_src, precision=lax.Precision.HIGHEST)
             + jnp.eye(n_pad, dtype=jnp.float32)).astype(jnp.bfloat16)

    # Pooling operators: padded nodes get the non-existent graph id g_pad so
    # they drop out of both pools; BN uses the `valid` row mask.
    batch_pad = jnp.concatenate(
        [batch.astype(jnp.int32), jnp.full((n_pad - n,), g_pad, jnp.int32)])
    gids = jnp.arange(g_pad, dtype=jnp.int32)
    onehot = (batch_pad[None, :] == gids[:, None]).astype(jnp.float32)  # [G_pad, N_pad]
    counts = jnp.sum(onehot, axis=1, keepdims=True)
    pmean = (onehot / jnp.maximum(counts, 1.0)).astype(matmul_dtype)
    valid = (jnp.arange(n_pad) < n).astype(jnp.float32)[:, None]        # [N_pad, 1]

    # Per-graph contiguous segments (batch sorted by graph id, PyG-style).
    counts_g = counts[:, 0].astype(jnp.int32)                            # [G_pad]
    starts_g = jnp.concatenate(
        [jnp.zeros((1,), jnp.int32), jnp.cumsum(counts_g)[:-1].astype(jnp.int32)])
    # TODO(synk): pass max-nodes-per-graph statically when calling under jit
    # (the int() below reads the concrete batch on the host).
    seg_pad = int(jnp.max(counts_g))
    seg_pad = min(n_pad, max(8, -(-seg_pad // 8) * 8))

    inputs = [x, a_hat, pmean, valid, starts_g, counts_g,
              params["enc_w"].astype(jnp.float32), params["enc_b"]]
    for p in params["layers"]:
        inputs += [p["w1"].astype(matmul_dtype), p["b1"],
                   p["w2"].astype(matmul_dtype), p["b2"],
                   p["gamma"], p["beta"]]

    vmem_spec = pl.BlockSpec(memory_space=pltpu.MemorySpace.VMEM)
    smem_spec = pl.BlockSpec(memory_space=pltpu.MemorySpace.SMEM)
    in_specs = ([vmem_spec, vmem_spec, vmem_spec, vmem_spec, smem_spec, smem_spec]
                + [vmem_spec] * (2 + 6 * num_layer))

    out = pl.pallas_call(
        functools.partial(_fused_gnn_kernel, num_layer=num_layer,
                          inv_n=1.0 / float(n), n_pad=n_pad, seg_pad=seg_pad,
                          g_pad=g_pad, matmul_dtype=matmul_dtype),
        out_shape=jax.ShapeDtypeStruct((g_pad, 2 * emb_dim), jnp.float32),
        in_specs=in_specs,
        out_specs=vmem_spec,
        scratch_shapes=[pltpu.VMEM((n_pad, emb_dim), jnp.float32)],
        compiler_params=pltpu.CompilerParams(
            vmem_limit_bytes=_vmem_limit_bytes(n_pad, g_pad, emb_dim,
                                               input_dim, num_layer)),
    )(*inputs)

    return out[:num_graphs]                          # [G, 2*emb] = [mean | max]


# --------------------------- pure-JAX reference --------------------------------

def gnn_reference(node_type, num_inv_pred, edge_index, batch, params, num_graphs):
    hi = lax.Precision.HIGHEST
    n = node_type.shape[0]
    x = jnp.stack([node_type, num_inv_pred], axis=1).astype(jnp.float32)
    src, dst = edge_index[0], edge_index[1]
    a_hat = (jnp.zeros((n, n), jnp.float32).at[dst, src].add(1.0)
             + jnp.eye(n, dtype=jnp.float32))

    w_enc = params["enc_w"]
    h = x[:, 0:1] * w_enc[0:1, :] + x[:, 1:2] * w_enc[1:2, :] + params["enc_b"]
    num_layer = len(params["layers"])
    for li, p in enumerate(params["layers"]):
        agg = jnp.dot(a_hat, h, precision=hi)
        z = jnp.maximum(jnp.dot(agg, p["w1"], precision=hi) + p["b1"], 0.0)
        z = jnp.dot(z, p["w2"], precision=hi) + p["b2"]
        mean = jnp.mean(z, axis=0, keepdims=True)
        var = jnp.mean((z - mean) ** 2, axis=0, keepdims=True)
        z = (z - mean) / jnp.sqrt(var + BN_EPS) * p["gamma"] + p["beta"]
        if li != num_layer - 1:
            z = jnp.maximum(z, 0.0)
        h = z

    onehot = (batch[None, :] == jnp.arange(num_graphs, dtype=batch.dtype)[:, None])
    onehot = onehot.astype(jnp.float32)
    counts = jnp.sum(onehot, axis=1, keepdims=True)
    mean_pool = jnp.dot(onehot / jnp.maximum(counts, 1.0), h, precision=hi)
    masked = jnp.where(onehot[:, :, None] > 0.5, h[None, :, :], -jnp.inf)
    max_pool = jnp.max(masked, axis=1)
    return jnp.concatenate([mean_pool, max_pool], axis=1)


# ----------------------------- param init --------------------------------------

def init_params(key, input_dim, emb_dim, num_layer):
    ks = jax.random.split(key, 2 + 4 * num_layer)
    kit = iter(ks)

    def lin(k, fin, fout):
        return jax.random.normal(k, (fin, fout), jnp.float32) / jnp.sqrt(fin)

    params = {
        "enc_w": lin(next(kit), 2, input_dim),
        "enc_b": jax.random.normal(next(kit), (1, input_dim), jnp.float32) * 0.1,
        "layers": [],
    }
    for layer in range(num_layer):
        din = input_dim if layer == 0 else emb_dim
        params["layers"].append({
            "w1": lin(next(kit), din, emb_dim),
            "b1": jax.random.normal(next(kit), (1, emb_dim), jnp.float32) * 0.1,
            "w2": lin(next(kit), emb_dim, emb_dim),
            "b2": jax.random.normal(next(kit), (1, emb_dim), jnp.float32) * 0.1,
            # BatchNorm1d affine params (PyTorch default: gamma=1, beta=0)
            "gamma": jnp.ones((1, emb_dim), jnp.float32),
            "beta": jnp.zeros((1, emb_dim), jnp.float32),
        })
    return params


# --------------------------------- main -----------------------------------------

if __name__ == "__main__":
    N_NODES = 64
    N_EDGES = 128
    INPUT_DIM = 128          # lane-dense feature dim
    EMB_DIM = 128            # module default emb_dim
    NUM_LAYER = 2
    NUM_GRAPHS = 4

    key = jax.random.PRNGKey(0)
    k_p, k_nt, k_ip, k_src, k_dst = jax.random.split(key, 5)

    params = init_params(k_p, INPUT_DIM, EMB_DIM, NUM_LAYER)

    node_type = jax.random.randint(k_nt, (N_NODES,), 0, 4).astype(jnp.float32)
    num_inv_pred = jax.random.randint(k_ip, (N_NODES,), 0, 3).astype(jnp.float32)

    # Each graph gets 16 consecutive nodes; edges stay within their graph.
    nodes_per_graph = N_NODES // NUM_GRAPHS
    batch = jnp.repeat(jnp.arange(NUM_GRAPHS, dtype=jnp.int32), nodes_per_graph)
    e_graph = jax.random.randint(k_src, (N_EDGES,), 0, NUM_GRAPHS)
    src_local = jax.random.randint(k_src, (N_EDGES,), 0, nodes_per_graph)
    dst_local = jax.random.randint(k_dst, (N_EDGES,), 0, nodes_per_graph)
    edge_index = jnp.stack(
        [e_graph * nodes_per_graph + src_local,
         e_graph * nodes_per_graph + dst_local], axis=0).astype(jnp.int32)

    ref = gnn_reference(node_type, num_inv_pred, edge_index, batch, params,
                        NUM_GRAPHS)

    # Default bf16 MXU path (v5e / v6e / v7x), f32 accumulation.
    out_bf16 = gnn_forward(node_type, num_inv_pred, edge_index, batch, params,
                           NUM_GRAPHS)
    out_bf16 = jax.block_until_ready(out_bf16)
    assert out_bf16.shape == (NUM_GRAPHS, 2 * EMB_DIM), out_bf16.shape
    assert jnp.allclose(out_bf16, ref, atol=2e-1, rtol=2e-1), (
        float(jnp.max(jnp.abs(out_bf16 - ref))))

    # f32 matmul path: tighter check against the pure-JAX reference.
    out_f32 = gnn_forward(node_type, num_inv_pred, edge_index, batch, params,
                          NUM_GRAPHS, matmul_dtype=jnp.float32)
    out_f32 = jax.block_until_ready(out_f32)
    assert jnp.allclose(out_f32, ref, atol=3e-2, rtol=3e-2), (
        float(jnp.max(jnp.abs(out_f32 - ref))))

    print("KERNEL_OK")
</pallas_src>

<mosaic_0001>
module attributes {stable_mosaic.version = 11 : i64} {
  func.func @_fused_gnn_kernel(%arg0: memref<128x2xf32, #tpu.memory_space<vmem>>, %arg1: memref<128x128xbf16, #tpu.memory_space<vmem>>, %arg2: memref<8x128xbf16, #tpu.memory_space<vmem>>, %arg3: memref<128x1xf32, #tpu.memory_space<vmem>>, %arg4: memref<8xi32, #tpu.memory_space<smem>>, %arg5: memref<8xi32, #tpu.memory_space<smem>>, %arg6: memref<2x128xf32, #tpu.memory_space<vmem>>, %arg7: memref<1x128xf32, #tpu.memory_space<vmem>>, %arg8: memref<128x128xbf16, #tpu.memory_space<vmem>>, %arg9: memref<1x128xf32, #tpu.memory_space<vmem>>, %arg10: memref<128x128xbf16, #tpu.memory_space<vmem>>, %arg11: memref<1x128xf32, #tpu.memory_space<vmem>>, %arg12: memref<1x128xf32, #tpu.memory_space<vmem>>, %arg13: memref<1x128xf32, #tpu.memory_space<vmem>>, %arg14: memref<128x128xbf16, #tpu.memory_space<vmem>>, %arg15: memref<1x128xf32, #tpu.memory_space<vmem>>, %arg16: memref<128x128xbf16, #tpu.memory_space<vmem>>, %arg17: memref<1x128xf32, #tpu.memory_space<vmem>>, %arg18: memref<1x128xf32, #tpu.memory_space<vmem>>, %arg19: memref<1x128xf32, #tpu.memory_space<vmem>>, %arg20: memref<8x256xf32, #tpu.memory_space<vmem>>, %arg21: memref<128x128xf32, #tpu.memory_space<vmem>>) attributes {dimension_semantics = [], scalar_prefetch = 0 : i64, scratch_operands = 1 : i64, tpu.core_type = #tpu.core_type<tc>} {
    %c0 = arith.constant 0 : index
    %c0_0 = arith.constant 0 : index
    %0 = vector.load %arg3[%c0, %c0_0] : memref<128x1xf32, #tpu.memory_space<vmem>>, vector<128x1xf32>
    %c0_1 = arith.constant 0 : index
    %c0_2 = arith.constant 0 : index
    %1 = vector.load %arg0[%c0_1, %c0_2] : memref<128x2xf32, #tpu.memory_space<vmem>>, vector<128x2xf32>
    %c0_3 = arith.constant 0 : index
    %c0_4 = arith.constant 0 : index
    %2 = vector.load %arg6[%c0_3, %c0_4] : memref<2x128xf32, #tpu.memory_space<vmem>>, vector<2x128xf32>
    %3 = vector.extract_strided_slice %1 {offsets = [0, 0], sizes = [128, 1], strides = [1, 1]} : vector<128x2xf32> to vector<128x1xf32>
    %4 = vector.extract_strided_slice %2 {offsets = [0, 0], sizes = [1, 128], strides = [1, 1]} : vector<2x128xf32> to vector<1x128xf32>
    %5 = vector.broadcast %3 : vector<128x1xf32> to vector<128x128xf32>
    %6 = vector.broadcast %4 : vector<1x128xf32> to vector<128x128xf32>
    %7 = arith.mulf %5, %6 : vector<128x128xf32>
    %8 = vector.extract_strided_slice %1 {offsets = [0, 1], sizes = [128, 1], strides = [1, 1]} : vector<128x2xf32> to vector<128x1xf32>
    %9 = vector.extract_strided_slice %2 {offsets = [1, 0], sizes = [1, 128], strides = [1, 1]} : vector<2x128xf32> to vector<1x128xf32>
    %10 = vector.broadcast %8 : vector<128x1xf32> to vector<128x128xf32>
    %11 = vector.broadcast %9 : vector<1x128xf32> to vector<128x128xf32>
    %12 = arith.mulf %10, %11 : vector<128x128xf32>
    %13 = arith.addf %7, %12 : vector<128x128xf32>
    %c0_5 = arith.constant 0 : index
    %c0_6 = arith.constant 0 : index
    %14 = vector.load %arg7[%c0_5, %c0_6] : memref<1x128xf32, #tpu.memory_space<vmem>>, vector<1x128xf32>
    %15 = vector.broadcast %14 : vector<1x128xf32> to vector<128x128xf32>
    %16 = arith.addf %13, %15 : vector<128x128xf32>
    %c0_7 = arith.constant 0 : index
    %c0_8 = arith.constant 0 : index
    %17 = vector.load %arg1[%c0_7, %c0_8] : memref<128x128xbf16, #tpu.memory_space<vmem>>, vector<128x128xbf16>
    %c0_9 = arith.constant 0 : index
    %c0_10 = arith.constant 0 : index
    %18 = vector.load %arg8[%c0_9, %c0_10] : memref<128x128xbf16, #tpu.memory_space<vmem>>, vector<128x128xbf16>
    %c0_11 = arith.constant 0 : index
    %c0_12 = arith.constant 0 : index
    %19 = vector.load %arg9[%c0_11, %c0_12] : memref<1x128xf32, #tpu.memory_space<vmem>>, vector<1x128xf32>
    %c0_13 = arith.constant 0 : index
    %c0_14 = arith.constant 0 : index
    %20 = vector.load %arg10[%c0_13, %c0_14] : memref<128x128xbf16, #tpu.memory_space<vmem>>, vector<128x128xbf16>
    %c0_15 = arith.constant 0 : index
    %c0_16 = arith.constant 0 : index
    %21 = vector.load %arg11[%c0_15, %c0_16] : memref<1x128xf32, #tpu.memory_space<vmem>>, vector<1x128xf32>
    %c0_17 = arith.constant 0 : index
    %c0_18 = arith.constant 0 : index
    %22 = vector.load %arg12[%c0_17, %c0_18] : memref<1x128xf32, #tpu.memory_space<vmem>>, vector<1x128xf32>
    %c0_19 = arith.constant 0 : index
    %c0_20 = arith.constant 0 : index
    %23 = vector.load %arg13[%c0_19, %c0_20] : memref<1x128xf32, #tpu.memory_space<vmem>>, vector<1x128xf32>
    %24 = arith.truncf %16 : vector<128x128xf32> to vector<128x128xbf16>
    %cst = arith.constant dense<0.000000e+00> : vector<128x128xf32>
    %25 = tpu.matmul %17, %24, %cst {dimension_numbers = #tpu.dot_dimension_numbers<[1], [0], [0], [1], [0, 0, 1, 1], [], []>} : vector<128x128xbf16>, vector<128x128xbf16>, vector<128x128xf32> -> vector<128x128xf32>
    %26 = arith.truncf %25 : vector<128x128xf32> to vector<128x128xbf16>
    %cst_21 = arith.constant dense<0.000000e+00> : vector<128x128xf32>
    %27 = tpu.matmul %26, %18, %cst_21 {dimension_numbers = #tpu.dot_dimension_numbers<[1], [0], [0], [1], [0, 0, 1, 1], [], []>} : vector<128x128xbf16>, vector<128x128xbf16>, vector<128x128xf32> -> vector<128x128xf32>
    %28 = vector.broadcast %19 : vector<1x128xf32> to vector<128x128xf32>
    %29 = arith.addf %27, %28 : vector<128x128xf32>
    %cst_22 = arith.constant 0.000000e+00 : f32
    %30 = vector.broadcast %cst_22 : f32 to vector<128x128xf32>
    %31 = arith.maximumf %29, %30 : vector<128x128xf32>
    %32 = arith.truncf %31 : vector<128x128xf32> to vector<128x128xbf16>
    %cst_23 = arith.constant dense<0.000000e+00> : vector<128x128xf32>
    %33 = tpu.matmul %32, %20, %cst_23 {dimension_numbers = #tpu.dot_dimension_numbers<[1], [0], [0], [1], [0, 0, 1, 1], [], []>} : vector<128x128xbf16>, vector<128x128xbf16>, vector<128x128xf32> -> vector<128x128xf32>
    %34 = vector.broadcast %21 : vector<1x128xf32> to vector<128x128xf32>
    %35 = arith.addf %33, %34 : vector<128x128xf32>
    %36 = vector.broadcast %0 : vector<128x1xf32> to vector<128x128xf32>
    %37 = arith.mulf %35, %36 : vector<128x128xf32>
    %cst_24 = arith.constant dense<0.000000e+00> : vector<128xf32>
    %38 = vector.multi_reduction <add>, %37, %cst_24 [0] : vector<128x128xf32> to vector<128xf32>
    %39 = vector.shape_cast %38 : vector<128xf32> to vector<1x128xf32>
    %cst_25 = arith.constant 1.562500e-02 : f32
    %40 = vector.broadcast %cst_25 : f32 to vector<1x128xf32>
    %41 = arith.mulf %39, %40 : vector<1x128xf32>
    %42 = vector.broadcast %41 : vector<1x128xf32> to vector<128x128xf32>
    %43 = arith.subf %35, %42 : vector<128x128xf32>
    %44 = vector.broadcast %0 : vector<128x1xf32> to vector<128x128xf32>
    %45 = arith.mulf %43, %44 : vector<128x128xf32>
    %46 = arith.mulf %45, %45 : vector<128x128xf32>
    %cst_26 = arith.constant dense<0.000000e+00> : vector<128xf32>
    %47 = vector.multi_reduction <add>, %46, %cst_26 [0] : vector<128x128xf32> to vector<128xf32>
    %48 = vector.shape_cast %47 : vector<128xf32> to vector<1x128xf32>
    %cst_27 = arith.constant 1.562500e-02 : f32
    %49 = vector.broadcast %cst_27 : f32 to vector<1x128xf32>
    %50 = arith.mulf %48, %49 : vector<1x128xf32>
    %cst_28 = arith.constant 9.99999974E-6 : f32
    %51 = vector.broadcast %cst_28 : f32 to vector<1x128xf32>
    %52 = arith.addf %50, %51 : vector<1x128xf32>
    %53 = math.rsqrt %52 : vector<1x128xf32>
    %54 = arith.mulf %22, %53 : vector<1x128xf32>
    %55 = arith.mulf %41, %54 : vector<1x128xf32>
    %56 = arith.subf %23, %55 : vector<1x128xf32>
    %57 = vector.broadcast %54 : vector<1x128xf32> to vector<128x128xf32>
    %58 = arith.mulf %35, %57 : vector<128x128xf32>
    %59 = vector.broadcast %56 : vector<1x128xf32> to vector<128x128xf32>
    %60 = arith.addf %58, %59 : vector<128x128xf32>
    %cst_29 = arith.constant 0.000000e+00 : f32
    %61 = vector.broadcast %cst_29 : f32 to vector<128x128xf32>
    %62 = arith.maximumf %60, %61 : vector<128x128xf32>
    %c0_30 = arith.constant 0 : index
    %c0_31 = arith.constant 0 : index
    %63 = vector.load %arg14[%c0_30, %c0_31] : memref<128x128xbf16, #tpu.memory_space<vmem>>, vector<128x128xbf16>
    %c0_32 = arith.constant 0 : index
    %c0_33 = arith.constant 0 : index
    %64 = vector.load %arg15[%c0_32, %c0_33] : memref<1x128xf32, #tpu.memory_space<vmem>>, vector<1x128xf32>
    %c0_34 = arith.constant 0 : index
    %c0_35 = arith.constant 0 : index
    %65 = vector.load %arg16[%c0_34, %c0_35] : memref<128x128xbf16, #tpu.memory_space<vmem>>, vector<128x128xbf16>
    %c0_36 = arith.constant 0 : index
    %c0_37 = arith.constant 0 : index
    %66 = vector.load %arg17[%c0_36, %c0_37] : memref<1x128xf32, #tpu.memory_space<vmem>>, vector<1x128xf32>
    %c0_38 = arith.constant 0 : index
    %c0_39 = arith.constant 0 : index
    %67 = vector.load %arg18[%c0_38, %c0_39] : memref<1x128xf32, #tpu.memory_space<vmem>>, vector<1x128xf32>
    %c0_40 = arith.constant 0 : index
    %c0_41 = arith.constant 0 : index
    %68 = vector.load %arg19[%c0_40, %c0_41] : memref<1x128xf32, #tpu.memory_space<vmem>>, vector<1x128xf32>
    %69 = arith.truncf %62 : vector<128x128xf32> to vector<128x128xbf16>
    %cst_42 = arith.constant dense<0.000000e+00> : vector<128x128xf32>
    %70 = tpu.matmul %17, %69, %cst_42 {dimension_numbers = #tpu.dot_dimension_numbers<[1], [0], [0], [1], [0, 0, 1, 1], [], []>} : vector<128x128xbf16>, vector<128x128xbf16>, vector<128x128xf32> -> vector<128x128xf32>
    %71 = arith.truncf %70 : vector<128x128xf32> to vector<128x128xbf16>
    %cst_43 = arith.constant dense<0.000000e+00> : vector<128x128xf32>
    %72 = tpu.matmul %71, %63, %cst_43 {dimension_numbers = #tpu.dot_dimension_numbers<[1], [0], [0], [1], [0, 0, 1, 1], [], []>} : vector<128x128xbf16>, vector<128x128xbf16>, vector<128x128xf32> -> vector<128x128xf32>
    %73 = vector.broadcast %64 : vector<1x128xf32> to vector<128x128xf32>
    %74 = arith.addf %72, %73 : vector<128x128xf32>
    %cst_44 = arith.constant 0.000000e+00 : f32
    %75 = vector.broadcast %cst_44 : f32 to vector<128x128xf32>
    %76 = arith.maximumf %74, %75 : vector<128x128xf32>
    %77 = arith.truncf %76 : vector<128x128xf32> to vector<128x128xbf16>
    %cst_45 = arith.constant dense<0.000000e+00> : vector<128x128xf32>
    %78 = tpu.matmul %77, %65, %cst_45 {dimension_numbers = #tpu.dot_dimension_numbers<[1], [0], [0], [1], [0, 0, 1, 1], [], []>} : vector<128x128xbf16>, vector<128x128xbf16>, vector<128x128xf32> -> vector<128x128xf32>
    %79 = vector.broadcast %66 : vector<1x128xf32> to vector<128x128xf32>
    %80 = arith.addf %78, %79 : vector<128x128xf32>
    %81 = vector.broadcast %0 : vector<128x1xf32> to vector<128x128xf32>
    %82 = arith.mulf %80, %81 : vector<128x128xf32>
    %cst_46 = arith.constant dense<0.000000e+00> : vector<128xf32>
    %83 = vector.multi_reduction <add>, %82, %cst_46 [0] : vector<128x128xf32> to vector<128xf32>
    %84 = vector.shape_cast %83 : vector<128xf32> to vector<1x128xf32>
    %cst_47 = arith.constant 1.562500e-02 : f32
    %85 = vector.broadcast %cst_47 : f32 to vector<1x128xf32>
    %86 = arith.mulf %84, %85 : vector<1x128xf32>
    %87 = vector.broadcast %86 : vector<1x128xf32> to vector<128x128xf32>
    %88 = arith.subf %80, %87 : vector<128x128xf32>
    %89 = vector.broadcast %0 : vector<128x1xf32> to vector<128x128xf32>
    %90 = arith.mulf %88, %89 : vector<128x128xf32>
    %91 = arith.mulf %90, %90 : vector<128x128xf32>
    %cst_48 = arith.constant dense<0.000000e+00> : vector<128xf32>
    %92 = vector.multi_reduction <add>, %91, %cst_48 [0] : vector<128x128xf32> to vector<128xf32>
    %93 = vector.shape_cast %92 : vector<128xf32> to vector<1x128xf32>
    %cst_49 = arith.constant 1.562500e-02 : f32
    %94 = vector.broadcast %cst_49 : f32 to vector<1x128xf32>
    %95 = arith.mulf %93, %94 : vector<1x128xf32>
    %cst_50 = arith.constant 9.99999974E-6 : f32
    %96 = vector.broadcast %cst_50 : f32 to vector<1x128xf32>
    %97 = arith.addf %95, %96 : vector<1x128xf32>
    %98 = math.rsqrt %97 : vector<1x128xf32>
    %99 = arith.mulf %67, %98 : vector<1x128xf32>
    %100 = arith.mulf %86, %99 : vector<1x128xf32>
    %101 = arith.subf %68, %100 : vector<1x128xf32>
    %102 = vector.broadcast %99 : vector<1x128xf32> to vector<128x128xf32>
    %103 = arith.mulf %80, %102 : vector<128x128xf32>
    %104 = vector.broadcast %101 : vector<1x128xf32> to vector<128x128xf32>
    %105 = arith.addf %103, %104 : vector<128x128xf32>
    %c0_51 = arith.constant 0 : index
    %c0_52 = arith.constant 0 : index
    %106 = vector.load %arg21[%c0_51, %c0_52] : memref<128x128xf32, #tpu.memory_space<vmem>>, vector<128x128xf32>
    tpu.vector_store %arg21[%c0_51, %c0_52], %105 {strides = array<i32>} : memref<128x128xf32, #tpu.memory_space<vmem>>, vector<128x128xf32>,
    %c0_53 = arith.constant 0 : index
    %c0_54 = arith.constant 0 : index
    %107 = vector.load %arg2[%c0_53, %c0_54] : memref<8x128xbf16, #tpu.memory_space<vmem>>, vector<8x128xbf16>
    %108 = arith.truncf %105 : vector<128x128xf32> to vector<128x128xbf16>
    %cst_55 = arith.constant dense<0.000000e+00> : vector<8x128xf32>
    %109 = tpu.matmul %107, %108, %cst_55 {dimension_numbers = #tpu.dot_dimension_numbers<[1], [0], [0], [1], [0, 0, 1, 1], [], []>} : vector<8x128xbf16>, vector<128x128xbf16>, vector<8x128xf32> -> vector<8x128xf32>
    %c0_56 = arith.constant 0 : index
    %110 = memref.load %arg4[%c0_56] : memref<8xi32, #tpu.memory_space<smem>>
    %c0_57 = arith.constant 0 : index
    %111 = memref.load %arg5[%c0_57] : memref<8xi32, #tpu.memory_space<smem>>
    %c112_i32 = arith.constant 112 : i32
    %112 = arith.minsi %110, %c112_i32 : i32
    %c0_i32 = arith.constant 0 : i32
    %113 = arith.maxsi %c0_i32, %112 : i32
    %114 = arith.index_cast %113 : i32 to index
    %c0_58 = arith.constant 0 : index
    %115 = vector.load %arg21[%114, %c0_58] : memref<128x128xf32, #tpu.memory_space<vmem>>, vector<16x128xf32>
    %116 = tpu.iota {dimensions = array<i32: 0>} : vector<16x128xi32>
    %117 = vector.broadcast %113 : i32 to vector<16x128xi32>
    %118 = arith.addi %117, %116 : vector<16x128xi32>
    %119 = vector.broadcast %110 : i32 to vector<16x128xi32>
    %120 = arith.cmpi sge, %118, %119 : vector<16x128xi32>
    %121 = arith.addi %110, %111 : i32
    %122 = vector.broadcast %121 : i32 to vector<16x128xi32>
    %123 = arith.cmpi slt, %118, %122 : vector<16x128xi32>
    %124 = arith.andi %120, %123 : vector<16x128xi1>
    %cst_59 = arith.constant -1.000000e+30 : f32
    %125 = vector.broadcast %cst_59 : f32 to vector<16x128xf32>
    %126 = arith.select %124, %115, %125 : vector<16x128xi1>, vector<16x128xf32>
    %cst_60 = arith.constant dense<0xFF800000> : vector<128xf32>
    %127 = vector.multi_reduction <maximumf>, %126, %cst_60 [0] : vector<16x128xf32> to vector<128xf32>
    %128 = vector.shape_cast %127 : vector<128xf32> to vector<1x128xf32>
    %c1 = arith.constant 1 : index
    %129 = memref.load %arg4[%c1] : memref<8xi32, #tpu.memory_space<smem>>
    %c1_61 = arith.constant 1 : index
    %130 = memref.load %arg5[%c1_61] : memref<8xi32, #tpu.memory_space<smem>>
    %c112_i32_62 = arith.constant 112 : i32
    %131 = arith.minsi %129, %c112_i32_62 : i32
    %c0_i32_63 = arith.constant 0 : i32
    %132 = arith.maxsi %c0_i32_63, %131 : i32
    %133 = arith.index_cast %132 : i32 to index
    %c0_64 = arith.constant 0 : index
    %134 = vector.load %arg21[%133, %c0_64] : memref<128x128xf32, #tpu.memory_space<vmem>>, vector<16x128xf32>
    %135 = tpu.iota {dimensions = array<i32: 0>} : vector<16x128xi32>
    %136 = vector.broadcast %132 : i32 to vector<16x128xi32>
    %137 = arith.addi %136, %135 : vector<16x128xi32>
    %138 = vector.broadcast %129 : i32 to vector<16x128xi32>
    %139 = arith.cmpi sge, %137, %138 : vector<16x128xi32>
    %140 = arith.addi %129, %130 : i32
    %141 = vector.broadcast %140 : i32 to vector<16x128xi32>
    %142 = arith.cmpi slt, %137, %141 : vector<16x128xi32>
    %143 = arith.andi %139, %142 : vector<16x128xi1>
    %cst_65 = arith.constant -1.000000e+30 : f32
    %144 = vector.broadcast %cst_65 : f32 to vector<16x128xf32>
    %145 = arith.select %143, %134, %144 : vector<16x128xi1>, vector<16x128xf32>
    %cst_66 = arith.constant dense<0xFF800000> : vector<128xf32>
    %146 = vector.multi_reduction <maximumf>, %145, %cst_66 [0] : vector<16x128xf32> to vector<128xf32>
    %147 = vector.shape_cast %146 : vector<128xf32> to vector<1x128xf32>
    %c2 = arith.constant 2 : index
    %148 = memref.load %arg4[%c2] : memref<8xi32, #tpu.memory_space<smem>>
    %c2_67 = arith.constant 2 : index
    %149 = memref.load %arg5[%c2_67] : memref<8xi32, #tpu.memory_space<smem>>
    %c112_i32_68 = arith.constant 112 : i32
    %150 = arith.minsi %148, %c112_i32_68 : i32
    %c0_i32_69 = arith.constant 0 : i32
    %151 = arith.maxsi %c0_i32_69, %150 : i32
    %152 = arith.index_cast %151 : i32 to index
    %c0_70 = arith.constant 0 : index
    %153 = vector.load %arg21[%152, %c0_70] : memref<128x128xf32, #tpu.memory_space<vmem>>, vector<16x128xf32>
    %154 = tpu.iota {dimensions = array<i32: 0>} : vector<16x128xi32>
    %155 = vector.broadcast %151 : i32 to vector<16x128xi32>
    %156 = arith.addi %155, %154 : vector<16x128xi32>
    %157 = vector.broadcast %148 : i32 to vector<16x128xi32>
    %158 = arith.cmpi sge, %156, %157 : vector<16x128xi32>
    %159 = arith.addi %148, %149 : i32
    %160 = vector.broadcast %159 : i32 to vector<16x128xi32>
    %161 = arith.cmpi slt, %156, %160 : vector<16x128xi32>
    %162 = arith.andi %158, %161 : vector<16x128xi1>
    %cst_71 = arith.constant -1.000000e+30 : f32
    %163 = vector.broadcast %cst_71 : f32 to vector<16x128xf32>
    %164 = arith.select %162, %153, %163 : vector<16x128xi1>, vector<16x128xf32>
    %cst_72 = arith.constant dense<0xFF800000> : vector<128xf32>
    %165 = vector.multi_reduction <maximumf>, %164, %cst_72 [0] : vector<16x128xf32> to vector<128xf32>
    %166 = vector.shape_cast %165 : vector<128xf32> to vector<1x128xf32>
    %c3 = arith.constant 3 : index
    %167 = memref.load %arg4[%c3] : memref<8xi32, #tpu.memory_space<smem>>
    %c3_73 = arith.constant 3 : index
    %168 = memref.load %arg5[%c3_73] : memref<8xi32, #tpu.memory_space<smem>>
    %c112_i32_74 = arith.constant 112 : i32
    %169 = arith.minsi %167, %c112_i32_74 : i32
    %c0_i32_75 = arith.constant 0 : i32
    %170 = arith.maxsi %c0_i32_75, %169 : i32
    %171 = arith.index_cast %170 : i32 to index
    %c0_76 = arith.constant 0 : index
    %172 = vector.load %arg21[%171, %c0_76] : memref<128x128xf32, #tpu.memory_space<vmem>>, vector<16x128xf32>
    %173 = tpu.iota {dimensions = array<i32: 0>} : vector<16x128xi32>
    %174 = vector.broadcast %170 : i32 to vector<16x128xi32>
    %175 = arith.addi %174, %173 : vector<16x128xi32>
    %176 = vector.broadcast %167 : i32 to vector<16x128xi32>
    %177 = arith.cmpi sge, %175, %176 : vector<16x128xi32>
    %178 = arith.addi %167, %168 : i32
    %179 = vector.broadcast %178 : i32 to vector<16x128xi32>
    %180 = arith.cmpi slt, %175, %179 : vector<16x128xi32>
    %181 = arith.andi %177, %180 : vector<16x128xi1>
    %cst_77 = arith.constant -1.000000e+30 : f32
    %182 = vector.broadcast %cst_77 : f32 to vector<16x128xf32>
    %183 = arith.select %181, %172, %182 : vector<16x128xi1>, vector<16x128xf32>
    %cst_78 = arith.constant dense<0xFF800000> : vector<128xf32>
    %184 = vector.multi_reduction <maximumf>, %183, %cst_78 [0] : vector<16x128xf32> to vector<128xf32>
    %185 = vector.shape_cast %184 : vector<128xf32> to vector<1x128xf32>
    %c4 = arith.constant 4 : index
    %186 = memref.load %arg4[%c4] : memref<8xi32, #tpu.memory_space<smem>>
    %c4_79 = arith.constant 4 : index
    %187 = memref.load %arg5[%c4_79] : memref<8xi32, #tpu.memory_space<smem>>
    %c112_i32_80 = arith.constant 112 : i32
    %188 = arith.minsi %186, %c112_i32_80 : i32
    %c0_i32_81 = arith.constant 0 : i32
    %189 = arith.maxsi %c0_i32_81, %188 : i32
    %190 = arith.index_cast %189 : i32 to index
    %c0_82 = arith.constant 0 : index
    %191 = vector.load %arg21[%190, %c0_82] : memref<128x128xf32, #tpu.memory_space<vmem>>, vector<16x128xf32>
    %192 = tpu.iota {dimensions = array<i32: 0>} : vector<16x128xi32>
    %193 = vector.broadcast %189 : i32 to vector<16x128xi32>
    %194 = arith.addi %193, %192 : vector<16x128xi32>
    %195 = vector.broadcast %186 : i32 to vector<16x128xi32>
    %196 = arith.cmpi sge, %194, %195 : vector<16x128xi32>
    %197 = arith.addi %186, %187 : i32
    %198 = vector.broadcast %197 : i32 to vector<16x128xi32>
    %199 = arith.cmpi slt, %194, %198 : vector<16x128xi32>
    %200 = arith.andi %196, %199 : vector<16x128xi1>
    %cst_83 = arith.constant -1.000000e+30 : f32
    %201 = vector.broadcast %cst_83 : f32 to vector<16x128xf32>
    %202 = arith.select %200, %191, %201 : vector<16x128xi1>, vector<16x128xf32>
    %cst_84 = arith.constant dense<0xFF800000> : vector<128xf32>
    %203 = vector.multi_reduction <maximumf>, %202, %cst_84 [0] : vector<16x128xf32> to vector<128xf32>
    %204 = vector.shape_cast %203 : vector<128xf32> to vector<1x128xf32>
    %c5 = arith.constant 5 : index
    %205 = memref.load %arg4[%c5] : memref<8xi32, #tpu.memory_space<smem>>
    %c5_85 = arith.constant 5 : index
    %206 = memref.load %arg5[%c5_85] : memref<8xi32, #tpu.memory_space<smem>>
    %c112_i32_86 = arith.constant 112 : i32
    %207 = arith.minsi %205, %c112_i32_86 : i32
    %c0_i32_87 = arith.constant 0 : i32
    %208 = arith.maxsi %c0_i32_87, %207 : i32
    %209 = arith.index_cast %208 : i32 to index
    %c0_88 = arith.constant 0 : index
    %210 = vector.load %arg21[%209, %c0_88] : memref<128x128xf32, #tpu.memory_space<vmem>>, vector<16x128xf32>
    %211 = tpu.iota {dimensions = array<i32: 0>} : vector<16x128xi32>
    %212 = vector.broadcast %208 : i32 to vector<16x128xi32>
    %213 = arith.addi %212, %211 : vector<16x128xi32>
    %214 = vector.broadcast %205 : i32 to vector<16x128xi32>
    %215 = arith.cmpi sge, %213, %214 : vector<16x128xi32>
    %216 = arith.addi %205, %206 : i32
    %217 = vector.broadcast %216 : i32 to vector<16x128xi32>
    %218 = arith.cmpi slt, %213, %217 : vector<16x128xi32>
    %219 = arith.andi %215, %218 : vector<16x128xi1>
    %cst_89 = arith.constant -1.000000e+30 : f32
    %220 = vector.broadcast %cst_89 : f32 to vector<16x128xf32>
    %221 = arith.select %219, %210, %220 : vector<16x128xi1>, vector<16x128xf32>
    %cst_90 = arith.constant dense<0xFF800000> : vector<128xf32>
    %222 = vector.multi_reduction <maximumf>, %221, %cst_90 [0] : vector<16x128xf32> to vector<128xf32>
    %223 = vector.shape_cast %222 : vector<128xf32> to vector<1x128xf32>
    %c6 = arith.constant 6 : index
    %224 = memref.load %arg4[%c6] : memref<8xi32, #tpu.memory_space<smem>>
    %c6_91 = arith.constant 6 : index
    %225 = memref.load %arg5[%c6_91] : memref<8xi32, #tpu.memory_space<smem>>
    %c112_i32_92 = arith.constant 112 : i32
    %226 = arith.minsi %224, %c112_i32_92 : i32
    %c0_i32_93 = arith.constant 0 : i32
    %227 = arith.maxsi %c0_i32_93, %226 : i32
    %228 = arith.index_cast %227 : i32 to index
    %c0_94 = arith.constant 0 : index
    %229 = vector.load %arg21[%228, %c0_94] : memref<128x128xf32, #tpu.memory_space<vmem>>, vector<16x128xf32>
    %230 = tpu.iota {dimensions = array<i32: 0>} : vector<16x128xi32>
    %231 = vector.broadcast %227 : i32 to vector<16x128xi32>
    %232 = arith.addi %231, %230 : vector<16x128xi32>
    %233 = vector.broadcast %224 : i32 to vector<16x128xi32>
    %234 = arith.cmpi sge, %232, %233 : vector<16x128xi32>
    %235 = arith.addi %224, %225 : i32
    %236 = vector.broadcast %235 : i32 to vector<16x128xi32>
    %237 = arith.cmpi slt, %232, %236 : vector<16x128xi32>
    %238 = arith.andi %234, %237 : vector<16x128xi1>
    %cst_95 = arith.constant -1.000000e+30 : f32
    %239 = vector.broadcast %cst_95 : f32 to vector<16x128xf32>
    %240 = arith.select %238, %229, %239 : vector<16x128xi1>, vector<16x128xf32>
    %cst_96 = arith.constant dense<0xFF800000> : vector<128xf32>
    %241 = vector.multi_reduction <maximumf>, %240, %cst_96 [0] : vector<16x128xf32> to vector<128xf32>
    %242 = vector.shape_cast %241 : vector<128xf32> to vector<1x128xf32>
    %c7 = arith.constant 7 : index
    %243 = memref.load %arg4[%c7] : memref<8xi32, #tpu.memory_space<smem>>
    %c7_97 = arith.constant 7 : index
    %244 = memref.load %arg5[%c7_97] : memref<8xi32, #tpu.memory_space<smem>>
    %c112_i32_98 = arith.constant 112 : i32
    %245 = arith.minsi %243, %c112_i32_98 : i32
    %c0_i32_99 = arith.constant 0 : i32
    %246 = arith.maxsi %c0_i32_99, %245 : i32
    %247 = arith.index_cast %246 : i32 to index
    %c0_100 = arith.constant 0 : index
    %248 = vector.load %arg21[%247, %c0_100] : memref<128x128xf32, #tpu.memory_space<vmem>>, vector<16x128xf32>
    %249 = tpu.iota {dimensions = array<i32: 0>} : vector<16x128xi32>
    %250 = vector.broadcast %246 : i32 to vector<16x128xi32>
    %251 = arith.addi %250, %249 : vector<16x128xi32>
    %252 = vector.broadcast %243 : i32 to vector<16x128xi32>
    %253 = arith.cmpi sge, %251, %252 : vector<16x128xi32>
    %254 = arith.addi %243, %244 : i32
    %255 = vector.broadcast %254 : i32 to vector<16x128xi32>
    %256 = arith.cmpi slt, %251, %255 : vector<16x128xi32>
    %257 = arith.andi %253, %256 : vector<16x128xi1>
    %cst_101 = arith.constant -1.000000e+30 : f32
    %258 = vector.broadcast %cst_101 : f32 to vector<16x128xf32>
    %259 = arith.select %257, %248, %258 : vector<16x128xi1>, vector<16x128xf32>
    %cst_102 = arith.constant dense<0xFF800000> : vector<128xf32>
    %260 = vector.multi_reduction <maximumf>, %259, %cst_102 [0] : vector<16x128xf32> to vector<128xf32>
    %261 = vector.shape_cast %260 : vector<128xf32> to vector<1x128xf32>
    %262 = tpu.concatenate %128, %147, %166, %185, %204, %223, %242, %261 in 0 : vector<1x128xf32>, vector<1x128xf32>, vector<1x128xf32>, vector<1x128xf32>, vector<1x128xf32>, vector<1x128xf32>, vector<1x128xf32>, vector<1x128xf32> -> vector<8x128xf32>
    %263 = tpu.concatenate %109, %262 in 1 : vector<8x128xf32>, vector<8x128xf32> -> vector<8x256xf32>
    %c0_103 = arith.constant 0 : index
    %c0_104 = arith.constant 0 : index
    %264 = vector.load %arg20[%c0_103, %c0_104] : memref<8x256xf32, #tpu.memory_space<vmem>>, vector<8x256xf32>
    tpu.vector_store %arg20[%c0_103, %c0_104], %263 {strides = array<i32>} : memref<8x256xf32, #tpu.memory_space<vmem>>, vector<8x256xf32>,
    return
  }
}

</mosaic_0001>

<bundles_post_ra>
// kernel: tpu_custom_call.1
= control target key start
LH: loop header
LB: loop body
LE: loop exit
PB: predicated region body
PF: predicated region fallthrough
CT: control target
= control target key end

     0   :  { %s4065_s0 = inlined_call_operand.vmem [shape: f32[128,2], index: 0, kind: input, shape index: {}]   ;;  %s4066_s1 = inlined_call_operand.vmem [shape: bf16[128,128], index: 1, kind: input, shape index: {}]   ;;  %s4067_s2 = inlined_call_operand.vmem [shape: bf16[8,128], index: 2, kind: input, shape index: {}]   ;;  %s4068_s3 = inlined_call_operand.vmem [shape: f32[128,1], index: 3, kind: input, shape index: {}]   ;;  %s4069_s4 = inlined_call_operand.vmem [shape: s32[8], index: 4, kind: input, shape index: {}]   ;;  %s4070_s5 = inlined_call_operand.vmem [shape: s32[8], index: 5, kind: input, shape index: {}]   ;;  %s4071_s6 = inlined_call_operand.vmem [shape: f32[2,128], index: 6, kind: input, shape index: {}]   ;;  %s4072_s7 = inlined_call_operand.vmem [shape: f32[1,128], index: 7, kind: input, shape index: {}]   ;;  %s4073_s8 = inlined_call_operand.vmem [shape: bf16[128,128], index: 8, kind: input, shape index: {}]   ;;  %s4074_s9 = inlined_call_operand.vmem [shape: f32[1,128], index: 9, kind: input, shape index: {}]   ;;  %s4075_s10 = inlined_call_operand.vmem [shape: bf16[128,128], index: 10, kind: input, shape index: {}]   ;;  %s4076_s11 = inlined_call_operand.vmem [shape: f32[1,128], index: 11, kind: input, shape index: {}]   ;;  %s4077_s12 = inlined_call_operand.vmem [shape: f32[1,128], index: 12, kind: input, shape index: {}]   ;;  %s4078_s13 = inlined_call_operand.vmem [shape: f32[1,128], index: 13, kind: input, shape index: {}]   ;;  %s4079_s14 = inlined_call_operand.vmem [shape: bf16[128,128], index: 14, kind: input, shape index: {}]   ;;  %s4080_s15 = inlined_call_operand.vmem [shape: f32[1,128], index: 15, kind: input, shape index: {}]   ;;  %s4081_s16 = inlined_call_operand.hbm [shape: bf16[128,128], index: 16, kind: input, shape index: {}]   ;;  %s4082_s17 = inlined_call_operand.vmem [shape: f32[1,128], index: 17, kind: input, shape index: {}]   ;;  %s4083_s18 = inlined_call_operand.vmem [shape: f32[1,128], index: 18, kind: input, shape index: {}]   ;;  %s4084_s19 = inlined_call_operand.vmem [shape: f32[1,128], index: 19, kind: input, shape index: {}]   ;;  %s4085_s20 = inlined_call_operand.hbm [shape: f32[8,256], index: 20, kind: output, shape index: {}]  }
   0x1   :  { %4093 = sst [smem:[#allocation17_spill]] %s4065_s0 }
   0x2   :  { %4094 = sst [smem:[#allocation18_spill]] %s4066_s1 }
   0x3   :  { %4095 = sst [smem:[#allocation19_spill]] %s4067_s2 }
   0x4   :  { %4096 = sst [smem:[#allocation20_spill]] %s4068_s3 }
   0x5   :  { %4097 = sst [smem:[#allocation21_spill]] %s4069_s4 }
   0x6   :  { %25 = vsyncpa [#allocation6], 0 }
   0x7   :  { %26 = vsyncpa [#allocation8], 0 }
   0x8   :  { %27 = vsyncpa [#allocation4], 0 }
   0x9   :  { %28 = vsyncpa [#allocation5], 0  ;;  %s4098_s23 = sld [smem:[#allocation21_spill]]  ;;  %s53_s3 = sshll.u32 %s4070_s5, 4  ;;  %s54_s3 = int_to_ptr.vmem [resolvable:$true] %s53_s3 }
   0xf   :  { %s43_s24 = sshll.u32 %s4098_s23, 4  ;;  %s44_s24 = int_to_ptr.vmem [resolvable:$true] %s43_s24 }
  0x10   :  { %s2641_s26 = scalar_lea.vmem %s44_s24, 16  ;;  %p2646_p1 = scmp.lt.s32.totalorder %s44_s24, %s44_s24 }
  0x11   :  { %p2642_p0 = scmp.ne.s32.totalorder %s44_s24, %s2641_s26  ;;  %p2647_p2 = scmp.lt.s32.totalorder %s2641_s26, %s2641_s26 }
  0x13   :  { %p2648_p3 = por %p2647_p2, %p2646_p1 }
  0x15   :  { %p2649_p4 = pnand %p2648_p3, %p2642_p0 }
  0x17   :  { %2652 = shalt.err (!%p2649_p4)
}
  0x18   :  { %s2717_s27 = smov [#allocation3]   ;;  %s2653_s28 = scalar_lea.vmem %s54_s3, 16 }
  0x19   :  { %46 = dma.vmem_to_smem %s44_s24, 16, %s2717_s27, [#allocation6]  }
  0x1a   :  { %p2654_p5 = scmp.ne.s32.totalorder %s54_s3, %s2653_s28  ;;  %p2658_p6 = scmp.lt.s32.totalorder %s54_s3, %s54_s3 }
  0x1b   :  { %p2659_p7 = scmp.lt.s32.totalorder %s2653_s28, %s2653_s28 }
  0x1d   :  { %p2660_p8 = por %p2659_p7, %p2658_p6 }
  0x1f   :  { %p2661_p9 = pnand %p2660_p8, %p2654_p5 }
  0x21   :  { %2664 = shalt.err (!%p2661_p9)
}
  0x22   :  { %s2718_s4 = smov [#allocation7]   ;;  %s2719_s5 = smov [#allocation9]  }
  0x23   :  { %56 = dma.vmem_to_smem %s54_s3, 16, %s2718_s4, [#allocation8]  }
  0x24   :  { %s82_s29 = sshll.u32 %s2719_s5, 4  ;;  %s2665_s21 = scalar_lea.hbm %s4081_s16, 1024  ;;  %s83_s29 = int_to_ptr.vmem [resolvable:$true] %s82_s29 }
  0x25   :  { %p2666_p10 = scmp.ne.s32.totalorder %s4081_s16, %s2665_s21  ;;  %p2669_p11 = scmp.lt.u32.totalorder %s2665_s21, %s4081_s16 }
  0x27   :  { %p2671_p12 = pnand %p2669_p11, %p2666_p10 }
  0x29   :  { %2674 = shalt.err (!%p2671_p12)
}
  0x2a   :  { %s2675_s2 = scalar_lea.vmem %s83_s29, 1024  ;;  %p2680_p0 = scmp.lt.s32.totalorder %s83_s29, %s83_s29 }
  0x2b   :  { %p2676_p13 = scmp.ne.s32.totalorder %s83_s29, %s2675_s2  ;;  %p2681_p1 = scmp.lt.s32.totalorder %s2675_s2, %s2675_s2 }
  0x2d   :  { %p2682_p2 = por %p2681_p1, %p2680_p0 }
  0x2f   :  { %p2683_p3 = pnand %p2682_p2, %p2676_p13 }
  0x31   :  { %2686 = shalt.err (!%p2683_p3)
}
  0x32   :  { %s2720_s25 = smov 64   ;;  %s2721_s3 = smov 4  }
  0x33   :  { %88 = dma.hbm_to_vmem [thread:$0]  %s4081_s16, 1024, %s83_s29, [#allocation4], %s2720_s25, %s2720_s25, %s2721_s3  }
  0x34   :  { %2709 = dma.done.wait [#allocation6], 16  }
  0x35   :  { %2710 = vsyncadd [#allocation6], 4294967280 }
  0x36   :  { %2711 = dma.done.wait [#allocation8], 16  }
  0x37   :  { %2712 = vsyncadd [#allocation8], 4294967280 }
  0x38   :  { %2713 = dma.done.wait [#allocation4], 1024  }
  0x39   :  { %2714 = vsyncadd [#allocation4], 4294966272 }
  0x3a   :  { %104 = sfence }
  0x3b   :  { %s4099_s5 = sld [smem:[#allocation17_spill]]  ;;  %v2722_v2 = vmov 1   ;;  %v2723_v7 = vmov 0   ;;  %s4100_s30 = sld [smem:[#allocation18_spill]]  ;;  %v2605_v19 = vld [vmem:[%s4073_s8] sm:$0xff]   ;;  %v2606_v20 = vld [vmem:[%s4073_s8 + $0x8] sm:$0xff]   ;;  %v219_v22 = vlaneseq }
  0x3c   :  { %2579 = vset.pattern.permute.xlu0 %v2722_v2  ;;  %2577 = vset.pattern.permute.xlu1 %v2722_v2  ;;  %v2607_v21 = vld [vmem:[%s4073_s8 + $0x10] sm:$0xff]   ;;  %v2608_v25 = vld [vmem:[%s4073_s8 + $0x18] sm:$0xff]   ;;  %v2609_v29 = vld [vmem:[%s4073_s8 + $0x20] sm:$0xff]   ;;  %s4102_s28 = sld [smem:[#allocation20_spill]]  ;;  %vm2725_vm0 = vmmov 0   ;;  %s3473_s1 = sld [smem:[#allocation3 + $0x1]] }
  0x3d   :  { %2387 = vmatprep.subr.bf16.mxu1 %v2605_v19  ;;  %v2926_v26 = vshrl.u32 %v219_v22, 7  ;;  %v138_v33 = vld [vmem:[%s4071_s6] sm:$0x3]  ;;  %v2610_v35 = vld [vmem:[%s4073_s8 + $0x28] sm:$0xff]   ;;  %v2611_v41 = vld [vmem:[%s4073_s8 + $0x30] sm:$0xff]   ;;  %s3486_s23 = sld [smem:[#allocation3 + $0x4]] }
  0x3e   :  { %2388 = vmatpush3.bf16.msra.mxu1 %v2605_v19  ;;  %v2959_v48 = vld [vmem:[%s4072_s7] ss:$0 sm:$0xff]  ;;  %s3488_s24 = sld [smem:[#allocation7]]  ;;  %s3496_s25 = sld [smem:[#allocation3 + $0x5]] }
  0x3f   :  { %2389 = vmatprep.subr.bf16.mxu1 %v2606_v20  ;;  %4101 = vst [vmem:[#allocation15_spill] sm:$0xff] %v2926_v26  ;;  %v305_v30 = vsub.s32 1, %v2926_v26  ;;  %v2935_v32 = vsub.s32 0, %v2926_v26  ;;  %s3498_s3 = sld [smem:[#allocation7 + $0x1]]  ;;  %s3501_s26 = sld [smem:[#allocation7 + $0x2]] }
  0x40   :  { %s3503_s27 = sld [smem:[#allocation3 + $0x6]]  ;;  %s4177_s7 = sld [smem:[#allocation19_spill]] }
  0x41   :  { %v124_v0 = vld [vmem:[%s4099_s5 + $0x10] sm:$0xff]  ;;  %v122_v1 = vld [vmem:[%s4099_s5] sm:$0xff]  ;;  %v123_v4 = vld [vmem:[%s4099_s5 + $0x8] sm:$0xff]  ;;  %v2943_v36 = vrot.slane %v138_v33, %v305_v30  ;;  %v2946_v37 = vrot.slane %v138_v33, %v2935_v32  ;;  %s3622_s21 = sld [smem:[#allocation7 + $0x6]]  ;;  %s2726_s16 = smov [#allocation10]  }
  0x42   :  { %248 = vperm.xlu0 %2579, %v124_v0   ;;  %240 = vperm.xlu1 %2577, %v122_v1   ;;  %v128_v3 = vld [vmem:[%s4099_s5 + $0x30] sm:$0xff]  ;;  %v125_v6 = vld [vmem:[%s4099_s5 + $0x18] sm:$0xff]  ;;  %v126_v8 = vld [vmem:[%s4099_s5 + $0x20] sm:$0xff]  ;;  %p1886_p5 = scmp.lt.s32.totalorder %s3473_s1, 112  ;;  %p2187_p7 = scmp.gt.s32.totalorder %s3473_s1, 0 }
  0x43   :  { %v132_v5 = vld [vmem:[%s4099_s5 + $0x50] sm:$0xff]  ;;  %v127_v9 = vld [vmem:[%s4099_s5 + $0x28] sm:$0xff]  ;;  %v129_v11 = vld [vmem:[%s4099_s5 + $0x38] sm:$0xff]  ;;  %2390 = vmatpush3.bf16.msra.mxu1 %v2606_v20  ;;  %p1976_p12 = scmp.lt.s32.totalorder %s3486_s23, 112  ;;  %p2208_p13 = scmp.gt.s32.totalorder %s3486_s23, 0 }
  0x44   :  { %v131_v10 = vld [vmem:[%s4099_s5 + $0x48] sm:$0xff]  ;;  %v130_v13 = vld [vmem:[%s4099_s5 + $0x40] sm:$0xff]  ;;  %v136_v14 = vld [vmem:[%s4099_s5 + $0x70] sm:$0xff]  ;;  %2391 = vmatprep.subr.bf16.mxu1 %v2607_v21  ;;  %s1887_s22 = scalar_select %p1886_p5, %s3473_s1, 112 }
  0x45   :  { %v135_v12 = vld [vmem:[%s4099_s5 + $0x68] sm:$0xff]  ;;  %v133_v15 = vld [vmem:[%s4099_s5 + $0x58] sm:$0xff]  ;;  %v134_v16 = vld [vmem:[%s4099_s5 + $0x60] sm:$0xff]  ;;  %s1977_s0 = scalar_select %p1976_p12, %s3486_s23, 112 }
  0x46   :  { %264 = vperm.xlu0 %2579, %v128_v3   ;;  %244 = vperm.xlu1 %2577, %v123_v4   ;;  %v137_v17 = vld [vmem:[%s4099_s5 + $0x78] sm:$0xff]  ;;  %v2911_v18 = vld [vmem:[%s4100_s30] sm:$0xff]   ;;  %s4181_s22 = smov (!%p2187_p7, %s1887_s22), 0  ;;  %p2006_p0 = scmp.lt.s32.totalorder %s3496_s25, 112 }
  0x47   :  { %2371 = vmatprep.mubr.bf16.mxu0 %v2911_v18  ;;  %2392 = vmatpush3.bf16.msra.mxu1 %v2607_v21  ;;  %s4187_s0 = smov (!%p2208_p13, %s1977_s0), 0  ;;  %p2215_p1 = scmp.gt.s32.totalorder %s3496_s25, 0 }
  0x48   :  { %2393 = vmatprep.subr.bf16.mxu1 %v2608_v25  ;;  %p2036_p2 = scmp.lt.s32.totalorder %s3503_s27, 112 }
  0x4a   :  { %280 = vperm.xlu0 %2579, %v132_v5   ;;  %2578 = vset.pattern.permute.xlu1 %v2723_v7 }
  0x4b   :  { %156 = vperm.xlu1 %2578, %v125_v6   ;;  %2394 = vmatpush3.bf16.msra.mxu1 %v2608_v25 }
  0x4c   :  { %2395 = vmatprep.subr.bf16.mxu1 %v2609_v29 }
  0x4e   :  { %2588 = vset.pattern.permute.xlu0 %v2723_v7 }
  0x4f   :  { %141 = vperm.xlu0 %2588, %v122_v1   ;;  %2580 = vset.pattern.permute.xlu1 %v2722_v2 }
  0x50   :  { %252 = vperm.xlu1 %2580, %v125_v6   ;;  %2396 = vmatpush3.bf16.msra.mxu1 %v2609_v29 }
  0x51   :  { %2397 = vmatprep.subr.bf16.mxu1 %v2610_v35 }
  0x53   :  { %146 = vperm.xlu0 %2588, %v123_v4  }
  0x54   :  { %2581 = vset.pattern.permute.xlu1 %v2723_v7  ;;  %2398 = vmatpush3.bf16.msra.mxu1 %v2610_v35 }
  0x55   :  { %161 = vperm.xlu1 %2581, %v126_v8   ;;  %2399 = vmatprep.subr.bf16.mxu1 %v2611_v41 }
  0x57   :  { %151 = vperm.xlu0 %2588, %v124_v0  }
  0x58   :  { %2400 = vmatpush3.bf16.msra.mxu1 %v2611_v41 }
  0x59   :  { %2582 = vset.pattern.permute.xlu1 %v2722_v2 }
  0x5a   :  { %256 = vperm.xlu1 %2582, %v126_v8  }
  0x5b   :  { %166 = vperm.xlu0 %2588, %v127_v9  }
  0x5e   :  { %260 = vperm.xlu1 %2582, %v127_v9  }
  0x5f   :  { %171 = vperm.xlu0 %2588, %v128_v3  }
  0x62   :  { %2583 = vset.pattern.permute.xlu1 %v2723_v7 }
  0x63   :  { %186 = vperm.xlu0 %2588, %v131_v10   ;;  %176 = vperm.xlu1 %2583, %v129_v11  }
  0x67   :  { %191 = vperm.xlu0 %2588, %v132_v5   ;;  %2584 = vset.pattern.permute.xlu1 %v2722_v2 }
  0x68   :  { %268 = vperm.xlu1 %2584, %v129_v11  }
  0x6b   :  { %206 = vperm.xlu0 %2588, %v135_v12  }
  0x6c   :  { %2585 = vset.pattern.permute.xlu1 %v2723_v7 }
  0x6d   :  { %181 = vperm.xlu1 %2585, %v130_v13  }
  0x6f   :  { %211 = vperm.xlu0 %2588, %v136_v14  }
  0x71   :  { %2586 = vset.pattern.permute.xlu1 %v2722_v2 }
  0x72   :  { %272 = vperm.xlu1 %2586, %v130_v13  }
  0x73   :  { %2593 = vset.pattern.permute.xlu0 %v2722_v2 }
  0x74   :  { %296 = vperm.xlu0 %2593, %v136_v14  }
  0x76   :  { %276 = vperm.xlu1 %2586, %v131_v10  }
  0x78   :  { %2596 = vset.pattern.permute.xlu0 %v2723_v7 }
  0x7a   :  { %2587 = vset.pattern.permute.xlu1 %v2723_v7 }
  0x7b   :  { %196 = vperm.xlu1 %2587, %v133_v15  }
  0x7f   :  { %2589 = vset.pattern.permute.xlu1 %v2722_v2 }
  0x80   :  { %284 = vperm.xlu1 %2589, %v133_v15  }
  0x84   :  { %2590 = vset.pattern.permute.xlu1 %v2723_v7 }
  0x85   :  { %201 = vperm.xlu1 %2590, %v134_v16  }
  0x89   :  { %2591 = vset.pattern.permute.xlu1 %v2722_v2 }
  0x8a   :  { %288 = vperm.xlu1 %2591, %v134_v16  }
  0x8e   :  { %292 = vperm.xlu1 %2591, %v135_v12  }
  0x92   :  { %2592 = vset.pattern.permute.xlu1 %v2723_v7 }
  0x93   :  { %216 = vperm.xlu1 %2592, %v137_v17  }
  0x97   :  { %2594 = vset.pattern.permute.xlu1 %v2722_v2 }
  0x98   :  { %300 = vperm.xlu1 %2594, %v137_v17  }
  0x9c   :  { %2595 = vset.pattern.permute.xlu1 %v2723_v7 }
  0xc1   :  { %v241_v23 = vpop.permute.xlu1 %240  ;;  %v249_v24 = vpop.permute.xlu0 %248 }
  0xc2   :  { %v307_v42 = vmul.f32 %v2943_v36, %v241_v23  ;;  %v309_v50 = vmul.f32 %v2943_v36, %v249_v24 }
  0xc5   :  { %v245_v27 = vpop.permute.xlu1 %244  ;;  %v265_v28 = vpop.permute.xlu0 %264 }
  0xc6   :  { %v308_v44 = vmul.f32 %v2943_v36, %v245_v27  ;;  %v313_v12 = vmul.f32 %v2943_v36, %v265_v28 }
  0xc9   :  { %v2932_v31 = vpop.permute.xlu0 %280 }
  0xca   :  { %v157_v34 = vpop.permute.xlu1 %156 }
  0xcb   :  { %v226_v51 = vmul.f32 %v2946_v37, %v157_v34 }
  0xce   :  { %v142_v38 = vpop.permute.xlu0 %141 }
  0xcf   :  { %v223_v39 = vmul.f32 %v2946_v37, %v142_v38  ;;  %v253_v40 = vpop.permute.xlu1 %252 }
  0xd0   :  { %v310_v46 = vmul.f32 %v2943_v36, %v253_v40 }
  0xd1   :  { %v323_v45 = vadd.f32 %v307_v42, %v223_v39 }
  0xd2   :  { %v147_v43 = vpop.permute.xlu0 %146  ;;  %v326_v54 = vadd.f32 %v310_v46, %v226_v51 }
  0xd3   :  { %v224_v47 = vmul.f32 %v2946_v37, %v147_v43  ;;  %v346_v56 = vadd.f32 %v2959_v48, %v323_v45  ;;  %v317_v43 = vmul.f32 %v2943_v36, %v2932_v31 }
  0xd4   :  { %v162_v49 = vpop.permute.xlu1 %161  ;;  %v349_v62 = vadd.f32 %v2959_v48, %v326_v54 }
  0xd5   :  { %v324_v52 = vadd.f32 %v308_v44, %v224_v47  ;;  %v227_v1 = vmul.f32 %v2946_v37, %v162_v49 }
  0xd6   :  { %v152_v53 = vpop.permute.xlu0 %151 }
  0xd7   :  { %v225_v55 = vmul.f32 %v2946_v37, %v152_v53  ;;  %v347_v57 = vadd.f32 %v2959_v48, %v324_v52 }
  0xd9   :  { %v325_v58 = vadd.f32 %v309_v50, %v225_v55  ;;  %v257_v59 = vpop.permute.xlu1 %256  ;;  %v414_v60 = vpack.c.bf16 %v347_v57, %v346_v56 }
  0xda   :  { %v311_v61 = vmul.f32 %v2943_v36, %v257_v59  ;;  %v167_v0 = vpop.permute.xlu0 %166 }
  0xdb   :  { %v348_v63 = vadd.f32 %v2959_v48, %v325_v58  ;;  %2355 = vmatprep.subr.bf16.mxu0 %v414_v60  ;;  %v228_v2 = vmul.f32 %v2946_v37, %v167_v0 }
  0xdc   :  { %2356 = vmatpush3.bf16.msra.mxu0 %v414_v60  ;;  %v327_v5 = vadd.f32 %v311_v61, %v227_v1 }
  0xdd   :  { %v261_v3 = vpop.permute.xlu1 %260  ;;  %v415_v4 = vpack.c.bf16 %v349_v62, %v348_v63 }
  0xde   :  { %v312_v6 = vmul.f32 %v2943_v36, %v261_v3  ;;  %v350_v8 = vadd.f32 %v2959_v48, %v327_v5  ;;  %v172_v11 = vpop.permute.xlu0 %171 }
  0xdf   :  { %2357 = vmatprep.subr.bf16.mxu0 %v415_v4  ;;  %v229_v13 = vmul.f32 %v2946_v37, %v172_v11 }
  0xe0   :  { %v328_v7 = vadd.f32 %v312_v6, %v228_v2  ;;  %2358 = vmatpush3.bf16.msra.mxu0 %v415_v4 }
  0xe1   :  { %v329_v16 = vadd.f32 %v313_v12, %v229_v13 }
  0xe2   :  { %v351_v9 = vadd.f32 %v2959_v48, %v328_v7  ;;  %v177_v10 = vpop.permute.xlu1 %176  ;;  %v187_v28 = vpop.permute.xlu0 %186 }
  0xe3   :  { %v230_v17 = vmul.f32 %v2946_v37, %v177_v10  ;;  %v352_v21 = vadd.f32 %v2959_v48, %v329_v16  ;;  %v232_v33 = vmul.f32 %v2946_v37, %v187_v28  ;;  %v3008_v16 = vld [vmem:[%s4100_s30 + $0x8] sm:$0xff]  }
  0xe4   :  { %v416_v14 = vpack.c.bf16 %v351_v9, %v350_v8  ;;  %v2618_v28 = vld [vmem:[%s4075_s10 + $0x28] sm:$0xff]  }
  0xe6   :  { %2359 = vmatprep.subr.bf16.mxu0 %v416_v14  ;;  %v192_v39 = vpop.permute.xlu0 %191 }
  0xe7   :  { %2360 = vmatpush3.bf16.msra.mxu0 %v416_v14  ;;  %v269_v15 = vpop.permute.xlu1 %268  ;;  %v233_v44 = vmul.f32 %v2946_v37, %v192_v39 }
  0xe8   :  { %v314_v19 = vmul.f32 %v2943_v36, %v269_v15 }
  0xe9   :  { %v333_v47 = vadd.f32 %v317_v43, %v233_v44 }
  0xea   :  { %v330_v20 = vadd.f32 %v314_v19, %v230_v17  ;;  %v207_v55 = vpop.permute.xlu0 %206  ;;  %v3013_v17 = vld [vmem:[%s4100_s30 + $0x10] sm:$0xff]  }
  0xeb   :  { %v356_v52 = vadd.f32 %v2959_v48, %v333_v47  ;;  %v236_v61 = vmul.f32 %v2946_v37, %v207_v55  ;;  %v3037_v19 = vld [vmem:[%s4100_s30 + $0x30] sm:$0xff]  }
  0xec   :  { %v353_v22 = vadd.f32 %v2959_v48, %v330_v20  ;;  %v182_v23 = vpop.permute.xlu1 %181  ;;  %v3044_v20 = vld [vmem:[%s4100_s30 + $0x38] sm:$0xff]  }
  0xed   :  { %v231_v29 = vmul.f32 %v2946_v37, %v182_v23  ;;  %v2614_v23 = vld [vmem:[%s4075_s10 + $0x8] sm:$0xff]  }
  0xee   :  { %v417_v24 = vpack.c.bf16 %v353_v22, %v352_v21  ;;  %v212_v58 = vpop.permute.xlu0 %211  ;;  %v2612_v21 = vld [vmem:[%s4073_s8 + $0x38] sm:$0xff]   ;;  %v2613_v22 = vld [vmem:[%s4075_s10] sm:$0xff]  }
  0xef   :  { %v237_v5 = vmul.f32 %v2946_v37, %v212_v58  ;;  %2401 = vmatprep.subr.bf16.mxu1 %v2612_v21  ;;  %v2620_v58 = vld [vmem:[%s4075_s10 + $0x38] sm:$0xff]  }
  0xf0   :  { %2361 = vmatprep.subr.bf16.mxu0 %v417_v24  ;;  %2402 = vmatpush3.bf16.msra.mxu1 %v2612_v21 }
  0xf1   :  { %2362 = vmatpush3.bf16.msra.mxu0 %v417_v24  ;;  %v273_v25 = vpop.permute.xlu1 %272  ;;  %v2615_v24 = vld [vmem:[%s4075_s10 + $0x10] sm:$0xff]  }
  0xf2   :  { %v315_v27 = vmul.f32 %v2943_v36, %v273_v25  ;;  %v2616_v25 = vld [vmem:[%s4075_s10 + $0x18] sm:$0xff]  }
  0xf3   :  { %v297_v1 = vpop.permute.xlu0 %296 }
  0xf4   :  { %v331_v34 = vadd.f32 %v315_v27, %v231_v29  ;;  %v321_v6 = vmul.f32 %v2943_v36, %v297_v1  ;;  %v2617_v27 = vld [vmem:[%s4075_s10 + $0x20] sm:$0xff]  }
  0xf5   :  { %v277_v30 = vpop.permute.xlu1 %276  ;;  %v114_v1 = vld [vmem:[%s4102_s28 + $0x40] sm:$0xff] }
  0xf6   :  { %v316_v35 = vmul.f32 %v2943_v36, %v277_v30  ;;  %v354_v40 = vadd.f32 %v2959_v48, %v331_v34  ;;  %v337_v9 = vadd.f32 %v321_v6, %v237_v5  ;;  %v118_v5 = vld [vmem:[%s4102_s28 + $0x60] sm:$0xff]  ;;  %v117_v6 = vld [vmem:[%s4102_s28 + $0x58] sm:$0xff] }
  0xf8   :  { %v332_v38 = vadd.f32 %v316_v35, %v232_v33  ;;  %v360_v13 = vadd.f32 %v2959_v48, %v337_v9  ;;  %v121_v9 = vld [vmem:[%s4102_s28 + $0x78] sm:$0xff] }
  0xfa   :  { %v355_v41 = vadd.f32 %v2959_v48, %v332_v38  ;;  %v197_v42 = vpop.permute.xlu1 %196 }
  0xfb   :  { %v234_v49 = vmul.f32 %v2946_v37, %v197_v42 }
  0xfc   :  { %v418_v45 = vpack.c.bf16 %v355_v41, %v354_v40 }
  0xfe   :  { %2363 = vmatprep.subr.bf16.mxu0 %v418_v45 }
  0xff   :  { %2364 = vmatpush3.bf16.msra.mxu0 %v418_v45  ;;  %v285_v46 = vpop.permute.xlu1 %284 }
 0x100   :  { %v318_v50 = vmul.f32 %v2943_v36, %v285_v46 }
 0x102   :  { %v334_v51 = vadd.f32 %v318_v50, %v234_v49 }
 0x104   :  { %v357_v53 = vadd.f32 %v2959_v48, %v334_v51  ;;  %v202_v54 = vpop.permute.xlu1 %201 }
 0x105   :  { %v235_v59 = vmul.f32 %v2946_v37, %v202_v54 }
 0x106   :  { %v419_v56 = vpack.c.bf16 %v357_v53, %v356_v52 }
 0x108   :  { %2365 = vmatprep.subr.bf16.mxu0 %v419_v56 }
 0x109   :  { %2366 = vmatpush3.bf16.msra.mxu0 %v419_v56  ;;  %v289_v31 = vpop.permute.xlu1 %288 }
 0x10a   :  { %v319_v57 = vmul.f32 %v2943_v36, %v289_v31 }
 0x10c   :  { %v335_v62 = vadd.f32 %v319_v57, %v235_v59  ;;  %v2619_v57 = vld [vmem:[%s4075_s10 + $0x30] sm:$0xff]   ;;  %v106_v59 = vld [vmem:[%s4102_s28] sm:$0xff]  ;;  %s3526_s10 = sld [smem:[#allocation3 + $0x7]] }
 0x10d   :  { %v293_v60 = vpop.permute.xlu1 %292  ;;  %903 = vperm.xlu1 %2595, %v106_v59  }
 0x10e   :  { %v320_v63 = vmul.f32 %v2943_v36, %v293_v60  ;;  %v358_v2 = vadd.f32 %v2959_v48, %v335_v62  ;;  %v108_v60 = vld [vmem:[%s4102_s28 + $0x10] sm:$0xff]  ;;  %v109_v62 = vld [vmem:[%s4102_s28 + $0x18] sm:$0xff] }
 0x110   :  { %v336_v0 = vadd.f32 %v320_v63, %v236_v61  ;;  %v110_v61 = vld [vmem:[%s4102_s28 + $0x20] sm:$0xff]  ;;  %v112_v63 = vld [vmem:[%s4102_s28 + $0x30] sm:$0xff] }
 0x111   :  { %913 = vperm.xlu1 %2595, %v108_v60  }
 0x112   :  { %v359_v3 = vadd.f32 %v2959_v48, %v336_v0  ;;  %v217_v4 = vpop.permute.xlu1 %216  ;;  %v111_v0 = vld [vmem:[%s4102_s28 + $0x28] sm:$0xff]  ;;  %p2066_p3 = scmp.lt.s32.totalorder %s3526_s10, 112  ;;  %p2229_p5 = scmp.gt.s32.totalorder %s3526_s10, 0 }
 0x113   :  { %v238_v10 = vmul.f32 %v2946_v37, %v217_v4  ;;  %v3025_v37 = vld [vmem:[%s4100_s30 + $0x20] sm:$0xff]   ;;  %v115_v4 = vld [vmem:[%s4102_s28 + $0x48] sm:$0xff] }
 0x114   :  { %v420_v7 = vpack.c.bf16 %v359_v3, %v358_v2  ;;  %v113_v2 = vld [vmem:[%s4102_s28 + $0x38] sm:$0xff]  ;;  %v116_v3 = vld [vmem:[%s4102_s28 + $0x50] sm:$0xff]  ;;  %s3680_s5 = scalar_select %p2066_p3, %s3526_s10, 112 }
 0x115   :  { %918 = vperm.xlu1 %2595, %v109_v62  }
 0x116   :  { %2367 = vmatprep.subr.bf16.mxu0 %v420_v7  ;;  %s4193_s5 = smov (!%p2229_p5, %s3680_s5), 0 }
 0x117   :  { %2368 = vmatpush3.bf16.msra.mxu0 %v420_v7  ;;  %v301_v8 = vpop.permute.xlu1 %300  ;;  %v120_v7 = vld [vmem:[%s4102_s28 + $0x70] sm:$0xff] }
 0x118   :  { %v322_v11 = vmul.f32 %v2943_v36, %v301_v8  ;;  %v3020_v36 = vld [vmem:[%s4100_s30 + $0x18] sm:$0xff]   ;;  %v119_v8 = vld [vmem:[%s4102_s28 + $0x68] sm:$0xff] }
 0x119   :  { %928 = vperm.xlu1 %2595, %v111_v0  }
 0x11a   :  { %v338_v12 = vadd.f32 %v322_v11, %v238_v10  ;;  %v2144_v10 = vld [vmem:[%s4074_s9] ss:$0 sm:$0xff]  ;;  %s3475_s9 = sld [smem:[#allocation3 + $0x2]] }
 0x11c   :  { %v361_v14 = vadd.f32 %v2959_v48, %v338_v12  ;;  %v3032_v48 = vld [vmem:[%s4100_s30 + $0x28] sm:$0xff]   ;;  %s1899_s30 = sadd.s32 %s3498_s3, %s3473_s1 }
 0x11d   :  { %938 = vperm.xlu1 %2595, %v113_v2  }
 0x11e   :  { %v421_v15 = vpack.c.bf16 %v361_v14, %v360_v13 }
 0x120   :  { %2369 = vmatprep.subr.bf16.mxu0 %v421_v15  ;;  %p1916_p8 = scmp.lt.s32.totalorder %s3475_s9, 112  ;;  %p2194_p10 = scmp.gt.s32.totalorder %s3475_s9, 0 }
 0x121   :  { %2370 = vmatpush3.bf16.msra.mxu0 %v421_v15  ;;  %948 = vperm.xlu1 %2595, %v115_v4   ;;  %s1929_s29 = sadd.s32 %s3501_s26, %s3475_s9 }
 0x122   :  { %2419 = vmatprep.subr.bf16.mxu0 %v2613_v22  ;;  %s1917_s2 = scalar_select %p1916_p8, %s3475_s9, 112 }
 0x124   :  { %2372 = vmatmul.mubr.bf16.vlgmr.msra.gmra.mrb[0].mxu0 %v3008_v16  ;;  %s4183_s2 = smov (!%p2194_p10, %s1917_s2), 0 }
 0x125   :  { %2375 = vmatprep.mubr.bf16.mxu0 %v3013_v17  ;;  %2420 = vmatpush3.bf16.msra.mxu0 %v2613_v22 }
 0x126   :  { %2421 = vmatprep.subr.bf16.mxu0 %v2614_v23  ;;  %958 = vperm.xlu1 %2595, %v117_v6  }
 0x129   :  { %2422 = vmatpush3.bf16.msra.mxu0 %v2614_v23 }
 0x12a   :  { %2423 = vmatprep.subr.bf16.mxu0 %v2615_v24  ;;  %968 = vperm.xlu1 %2595, %v119_v8  }
 0x12c   :  { %2376 = vmatmul.mubr.bf16.gmra.mrb[4].mxu0 %v3020_v36 }
 0x12d   :  { %2379 = vmatprep.mubr.bf16.mxu0 %v3025_v37  ;;  %2424 = vmatpush3.bf16.msra.mxu0 %v2615_v24 }
 0x12e   :  { %2425 = vmatprep.subr.bf16.mxu0 %v2616_v25  ;;  %978 = vperm.xlu1 %2595, %v121_v9  }
 0x131   :  { %2426 = vmatpush3.bf16.msra.mxu0 %v2616_v25 }
 0x132   :  { %2427 = vmatprep.subr.bf16.mxu0 %v2617_v27 }
 0x134   :  { %2380 = vmatmul.mubr.bf16.gmra.mrb[8].mxu0 %v3032_v48 }
 0x135   :  { %2383 = vmatprep.mubr.bf16.mxu0 %v3037_v19  ;;  %2428 = vmatpush3.bf16.msra.mxu0 %v2617_v27 }
 0x136   :  { %2429 = vmatprep.subr.bf16.mxu0 %v2618_v28 }
 0x139   :  { %2430 = vmatpush3.bf16.msra.mxu0 %v2618_v28 }
 0x13a   :  { %2431 = vmatprep.subr.bf16.mxu0 %v2619_v57 }
 0x13c   :  { %2384 = vmatmul.mubr.bf16.gmra.mrb[12].mxu0 %v3044_v20 }
 0x13d   :  { %2432 = vmatpush3.bf16.msra.mxu0 %v2619_v57 }
 0x13e   :  { %2433 = vmatprep.subr.bf16.mxu0 %v2620_v58 }
 0x141   :  { %2434 = vmatpush3.bf16.msra.mxu0 %v2620_v58 }
 0x1f7   :  { %v2373_v29 = vpop.f32.mrb[0].mxu0 }
 0x1f8   :  { %v504_v30 = vpop.f32.mrb[1].mxu0 }
 0x1f9   :  { %v2374_v33 = vpop.f32.mrb[2].mxu0 }
 0x1fa   :  { %v568_v34 = vpack.c.bf16 %v2374_v33, %v2373_v29  ;;  %v507_v35 = vpop.f32.mrb[3].mxu0 }
 0x1fb   :  { %v567_v38 = vpack.c.bf16 %v507_v35, %v504_v30 }
 0x1fd   :  { %2403 = vmatprep.mubr.bf16.mxu1 %v567_v38 }
 0x1fe   :  { %2404 = vmatmul.mubr.bf16.vlgmr.msra.gmra.mrb[0].mxu1 %v568_v34 }
 0x1ff   :  { %v2377_v39 = vpop.f32.mrb[4].mxu0 }
 0x200   :  { %v520_v40 = vpop.f32.mrb[5].mxu0 }
 0x201   :  { %v2378_v41 = vpop.f32.mrb[6].mxu0 }
 0x202   :  { %v570_v42 = vpack.c.bf16 %v2378_v41, %v2377_v39  ;;  %v523_v43 = vpop.f32.mrb[7].mxu0 }
 0x203   :  { %v569_v44 = vpack.c.bf16 %v523_v43, %v520_v40 }
 0x205   :  { %2407 = vmatprep.mubr.bf16.mxu1 %v569_v44 }
 0x206   :  { %2408 = vmatmul.mubr.bf16.gmra.mrb[4].mxu1 %v570_v42 }
 0x207   :  { %v2381_v45 = vpop.f32.mrb[8].mxu0 }
 0x208   :  { %v536_v46 = vpop.f32.mrb[9].mxu0 }
 0x209   :  { %v2382_v47 = vpop.f32.mrb[10].mxu0 }
 0x20a   :  { %v572_v49 = vpack.c.bf16 %v2382_v47, %v2381_v45  ;;  %v539_v50 = vpop.f32.mrb[11].mxu0 }
 0x20b   :  { %v571_v51 = vpack.c.bf16 %v539_v50, %v536_v46 }
 0x20d   :  { %2411 = vmatprep.mubr.bf16.mxu1 %v571_v51 }
 0x20e   :  { %2412 = vmatmul.mubr.bf16.gmra.mrb[8].mxu1 %v572_v49 }
 0x20f   :  { %v2385_v52 = vpop.f32.mrb[12].mxu0 }
 0x210   :  { %v552_v53 = vpop.f32.mrb[13].mxu0 }
 0x211   :  { %v2386_v54 = vpop.f32.mrb[14].mxu0 }
 0x212   :  { %v574_v55 = vpack.c.bf16 %v2386_v54, %v2385_v52  ;;  %v555_v56 = vpop.f32.mrb[15].mxu0 }
 0x213   :  { %v573_v31 = vpack.c.bf16 %v555_v56, %v552_v53 }
 0x215   :  { %2415 = vmatprep.mubr.bf16.mxu1 %v573_v31 }
 0x216   :  { %2416 = vmatmul.mubr.bf16.gmra.mrb[12].mxu1 %v574_v55 }
 0x217   :  { %2467 = vmatprep.mubr.bf16.mxu1 %v2911_v18  ;;  %v107_v18 = vld [vmem:[%s4102_s28 + $0x8] sm:$0xff]  ;;  %s3479_s28 = sld [smem:[#allocation3 + $0x3]] }
 0x218   :  { %908 = vperm.xlu0 %2596, %v107_v18  }
 0x21c   :  { %923 = vperm.xlu0 %2596, %v110_v61  }
 0x21d   :  { %p1946_p9 = scmp.lt.s32.totalorder %s3479_s28, 112  ;;  %p2201_p11 = scmp.gt.s32.totalorder %s3479_s28, 0 }
 0x21f   :  { %s1947_s6 = scalar_select %p1946_p9, %s3479_s28, 112 }
 0x220   :  { %933 = vperm.xlu0 %2596, %v112_v63  }
 0x221   :  { %s4185_s6 = smov (!%p2201_p11, %s1947_s6), 0 }
 0x224   :  { %943 = vperm.xlu0 %2596, %v114_v1  }
 0x228   :  { %953 = vperm.xlu0 %2596, %v116_v3  }
 0x22c   :  { %963 = vperm.xlu0 %2596, %v118_v5  }
 0x230   :  { %973 = vperm.xlu0 %2596, %v120_v7  }
 0x2d1   :  { %v2405_v11 = vpop.f32.mrb[0].mxu1 }
 0x2d2   :  { %v672_v12 = vadd.f32 %v2405_v11, %v2144_v10  ;;  %v663_v13 = vpop.f32.mrb[1].mxu1 }
 0x2d3   :  { %v664_v14 = vadd.f32 %v2144_v10, %v663_v13  ;;  %v2406_v15 = vpop.f32.mrb[2].mxu1  ;;  %v3126_v13 = vpop.permute.xlu1 %903 }
 0x2d4   :  { %v675_v21 = vadd.f32 %v2406_v15, %v2144_v10  ;;  %v666_v22 = vpop.f32.mrb[3].mxu1  ;;  %v728_v24 = vmax.f32 %v672_v12, 0.0  ;;  %v3130_v15 = vpop.permute.xlu0 %908 }
 0x2d5   :  { %v667_v23 = vadd.f32 %v2144_v10, %v666_v22  ;;  %v726_v27 = vmax.f32 %v664_v14, 0.0 }
 0x2d6   :  { %v729_v25 = vmax.f32 %v675_v21, 0.0 }
 0x2d7   :  { %v727_v28 = vmax.f32 %v667_v23, 0.0  ;;  %v3128_v14 = vpop.permute.xlu1 %913 }
 0x2d8   :  { %v743_v29 = vpack.c.bf16 %v729_v25, %v728_v24  ;;  %v3139_v23 = vpop.permute.xlu0 %923 }
 0x2d9   :  { %v742_v30 = vpack.c.bf16 %v727_v28, %v726_v27  ;;  %v2409_v33 = vpop.f32.mrb[4].mxu1 }
 0x2da   :  { %v688_v34 = vadd.f32 %v2409_v33, %v2144_v10  ;;  %v679_v35 = vpop.f32.mrb[5].mxu1 }
 0x2db   :  { %v680_v38 = vadd.f32 %v2144_v10, %v679_v35  ;;  %v2410_v39 = vpop.f32.mrb[6].mxu1  ;;  %2435 = vmatprep.mubr.bf16.mxu0 %v742_v30  ;;  %v3132_v21 = vpop.permute.xlu1 %918 }
 0x2dc   :  { %v691_v40 = vadd.f32 %v2410_v39, %v2144_v10  ;;  %v682_v41 = vpop.f32.mrb[7].mxu1  ;;  %2436 = vmatmul.mubr.bf16.vlgmr.msra.gmra.mrb[16].mxu0 %v743_v29  ;;  %v732_v43 = vmax.f32 %v688_v34, 0.0  ;;  %v3159_v39 = vpop.permute.xlu0 %933 }
 0x2dd   :  { %v683_v42 = vadd.f32 %v2144_v10, %v682_v41  ;;  %v730_v45 = vmax.f32 %v680_v38, 0.0 }
 0x2de   :  { %v733_v44 = vmax.f32 %v691_v40, 0.0 }
 0x2df   :  { %v731_v46 = vmax.f32 %v683_v42, 0.0  ;;  %v3144_v28 = vpop.permute.xlu1 %928 }
 0x2e0   :  { %v745_v47 = vpack.c.bf16 %v733_v44, %v732_v43 }
 0x2e1   :  { %v744_v49 = vpack.c.bf16 %v731_v46, %v730_v45  ;;  %v2413_v50 = vpop.f32.mrb[8].mxu1 }
 0x2e2   :  { %v704_v51 = vadd.f32 %v2413_v50, %v2144_v10  ;;  %v695_v52 = vpop.f32.mrb[9].mxu1 }
 0x2e3   :  { %v696_v53 = vadd.f32 %v2144_v10, %v695_v52  ;;  %v2414_v54 = vpop.f32.mrb[10].mxu1  ;;  %2439 = vmatprep.mubr.bf16.mxu0 %v744_v49  ;;  %v3163_v43 = vpop.permute.xlu1 %938 }
 0x2e4   :  { %v707_v55 = vadd.f32 %v2414_v54, %v2144_v10  ;;  %v698_v56 = vpop.f32.mrb[11].mxu1  ;;  %2440 = vmatmul.mubr.bf16.gmra.mrb[20].mxu0 %v745_v47  ;;  %v736_v57 = vmax.f32 %v704_v51, 0.0 }
 0x2e5   :  { %v699_v31 = vadd.f32 %v2144_v10, %v698_v56  ;;  %v734_v59 = vmax.f32 %v696_v53, 0.0 }
 0x2e6   :  { %v737_v58 = vmax.f32 %v707_v55, 0.0  ;;  %v3178_v55 = vpop.permute.xlu0 %943 }
 0x2e7   :  { %v735_v18 = vmax.f32 %v699_v31, 0.0 }
 0x2e8   :  { %v747_v60 = vpack.c.bf16 %v737_v58, %v736_v57  ;;  %v3185_v58 = vpop.permute.xlu1 %948 }
 0x2e9   :  { %v746_v61 = vpack.c.bf16 %v735_v18, %v734_v59  ;;  %v2417_v62 = vpop.f32.mrb[12].mxu1 }
 0x2ea   :  { %v720_v63 = vadd.f32 %v2417_v62, %v2144_v10  ;;  %v711_v0 = vpop.f32.mrb[13].mxu1 }
 0x2eb   :  { %v712_v1 = vadd.f32 %v2144_v10, %v711_v0  ;;  %v2418_v2 = vpop.f32.mrb[14].mxu1  ;;  %2443 = vmatprep.mubr.bf16.mxu0 %v746_v61 }
 0x2ec   :  { %v723_v3 = vadd.f32 %v2418_v2, %v2144_v10  ;;  %v714_v4 = vpop.f32.mrb[15].mxu1  ;;  %2444 = vmatmul.mubr.bf16.gmra.mrb[24].mxu0 %v747_v60  ;;  %v740_v6 = vmax.f32 %v720_v63, 0.0  ;;  %v3194_v2 = vpop.permute.xlu0 %953 }
 0x2ed   :  { %v715_v5 = vadd.f32 %v2144_v10, %v714_v4  ;;  %v738_v8 = vmax.f32 %v712_v1, 0.0  ;;  %v3137_v10 = vld [vmem:[%s4076_s11] ss:$0 sm:$0xff] }
 0x2ee   :  { %v741_v7 = vmax.f32 %v723_v3, 0.0 }
 0x2ef   :  { %v739_v9 = vmax.f32 %v715_v5, 0.0 }
 0x2f0   :  { %v749_v11 = vpack.c.bf16 %v741_v7, %v740_v6 }
 0x2f1   :  { %v748_v12 = vpack.c.bf16 %v739_v9, %v738_v8  ;;  %v3204_v8 = vpop.permute.xlu1 %958 }
 0x2f3   :  { %2447 = vmatprep.mubr.bf16.mxu0 %v748_v12 }
 0x2f4   :  { %2448 = vmatmul.mubr.bf16.gmra.mrb[28].mxu0 %v749_v11 }
 0x3af   :  { %v2437_v22 = vpop.f32.mrb[16].mxu0 }
 0x3b0   :  { %v838_v24 = vpop.f32.mrb[17].mxu0  ;;  %v3147_v30 = vadd.f32 %v2437_v22, %v3137_v10 }
 0x3b1   :  { %v3142_v25 = vadd.f32 %v3137_v10, %v838_v24  ;;  %v2438_v27 = vpop.f32.mrb[18].mxu0 }
 0x3b2   :  { %v841_v29 = vpop.f32.mrb[19].mxu0  ;;  %v3155_v35 = vadd.f32 %v2438_v27, %v3137_v10  ;;  %v983_v40 = vmul.f32 %v3128_v14, %v3147_v30 }
 0x3b3   :  { %v3150_v33 = vadd.f32 %v3137_v10, %v841_v29  ;;  %v981_v34 = vmul.f32 %v3126_v13, %v3142_v25  ;;  %v3213_v29 = vpop.permute.xlu0 %963 }
 0x3b4   :  { %v984_v45 = vmul.f32 %v3132_v21, %v3155_v35 }
 0x3b5   :  { %v982_v38 = vmul.f32 %v3130_v15, %v3150_v33 }
 0x3b7   :  { %v997_v41 = vadd.f32 %v982_v38, %v981_v34  ;;  %v2441_v42 = vpop.f32.mrb[20].mxu0 }
 0x3b8   :  { %v854_v44 = vpop.f32.mrb[21].mxu0  ;;  %v3171_v51 = vadd.f32 %v2441_v42, %v3137_v10 }
 0x3b9   :  { %v998_v46 = vadd.f32 %v997_v41, %v983_v40  ;;  %v3168_v47 = vadd.f32 %v3137_v10, %v854_v44  ;;  %v2442_v49 = vpop.f32.mrb[22].mxu0  ;;  %v3220_v44 = vpop.permute.xlu1 %968 }
 0x3ba   :  { %v857_v50 = vpop.f32.mrb[23].mxu0  ;;  %v3181_v31 = vadd.f32 %v2442_v49, %v3137_v10  ;;  %v987_v59 = vmul.f32 %v3159_v39, %v3171_v51  ;;  %4103 = vst [vmem:[#allocation16_spill] sm:$0xff] %v3220_v44 }
 0x3bb   :  { %v985_v52 = vmul.f32 %v3139_v23, %v3168_v47  ;;  %v999_v53 = vadd.f32 %v998_v46, %v984_v45  ;;  %v3176_v54 = vadd.f32 %v3137_v10, %v857_v50 }
 0x3bc   :  { %v988_v62 = vmul.f32 %v3163_v43, %v3181_v31 }
 0x3bd   :  { %v1000_v56 = vadd.f32 %v999_v53, %v985_v52  ;;  %v986_v57 = vmul.f32 %v3144_v28, %v3176_v54 }
 0x3bf   :  { %v1001_v18 = vadd.f32 %v1000_v56, %v986_v57  ;;  %v2445_v60 = vpop.f32.mrb[24].mxu0 }
 0x3c0   :  { %v870_v61 = vpop.f32.mrb[25].mxu0  ;;  %v3197_v4 = vadd.f32 %v2445_v60, %v3137_v10 }
 0x3c1   :  { %v1002_v63 = vadd.f32 %v1001_v18, %v987_v59  ;;  %v3192_v0 = vadd.f32 %v3137_v10, %v870_v61  ;;  %v2446_v1 = vpop.f32.mrb[26].mxu0  ;;  %v3235_v59 = vpop.permute.xlu0 %973 }
 0x3c2   :  { %v873_v3 = vpop.f32.mrb[27].mxu0  ;;  %v3207_v11 = vadd.f32 %v2446_v1, %v3137_v10  ;;  %v991_v22 = vmul.f32 %v3194_v2, %v3197_v4  ;;  %v3239_v61 = vpop.permute.xlu1 %978 }
 0x3c3   :  { %v989_v5 = vmul.f32 %v3178_v55, %v3192_v0  ;;  %v1003_v6 = vadd.f32 %v1002_v63, %v988_v62  ;;  %v3202_v7 = vadd.f32 %v3137_v10, %v873_v3 }
 0x3c4   :  { %v992_v38 = vmul.f32 %v3204_v8, %v3207_v11 }
 0x3c5   :  { %v1004_v9 = vadd.f32 %v1003_v6, %v989_v5  ;;  %v990_v12 = vmul.f32 %v3185_v58, %v3202_v7 }
 0x3c7   :  { %v1005_v24 = vadd.f32 %v1004_v9, %v990_v12  ;;  %v2449_v27 = vpop.f32.mrb[28].mxu0 }
 0x3c8   :  { %v886_v34 = vpop.f32.mrb[29].mxu0  ;;  %v3223_v46 = vadd.f32 %v2449_v27, %v3137_v10 }
 0x3c9   :  { %v1006_v40 = vadd.f32 %v1005_v24, %v991_v22  ;;  %v3218_v41 = vadd.f32 %v3137_v10, %v886_v34  ;;  %v2450_v42 = vpop.f32.mrb[30].mxu0 }
 0x3ca   :  { %v889_v45 = vpop.f32.mrb[31].mxu0  ;;  %v3231_v56 = vadd.f32 %v2450_v42, %v3137_v10  ;;  %v995_v18 = vmul.f32 %v3235_v59, %v3223_v46 }
 0x3cb   :  { %v993_v49 = vmul.f32 %v3213_v29, %v3218_v41  ;;  %v1007_v50 = vadd.f32 %v1006_v40, %v992_v38  ;;  %v3228_v52 = vadd.f32 %v3137_v10, %v889_v45 }
 0x3cc   :  { %v996_v62 = vmul.f32 %v3239_v61, %v3231_v56 }
 0x3cd   :  { %v1008_v53 = vadd.f32 %v1007_v50, %v993_v49  ;;  %v994_v57 = vmul.f32 %v3220_v44, %v3228_v52 }
 0x3cf   :  { %v1009_v60 = vadd.f32 %v1008_v53, %v994_v57 }
 0x3d1   :  { %v1010_v63 = vadd.f32 %v1009_v60, %v995_v18  ;;  %v2621_v60 = vld [vmem:[%s4079_s14] sm:$0xff]  }
 0x3d2   :  { %2483 = vmatprep.subr.bf16.mxu0 %v2621_v60 }
 0x3d3   :  { %v1011_v1 = vadd.f32 %v1010_v63, %v996_v62  ;;  %v2622_v62 = vld [vmem:[%s4079_s14 + $0x8] sm:$0xff]   ;;  %2484 = vmatpush3.bf16.msra.mxu0 %v2621_v60 }
 0x3d4   :  { %2485 = vmatprep.subr.bf16.mxu0 %v2622_v62 }
 0x3d5   :  { %v1012_v3 = vrot.slane %v1011_v1, 4 }
 0x3d7   :  { %v1013_v5 = vadd.f32 %v1012_v3, %v1011_v1  ;;  %2486 = vmatpush3.bf16.msra.mxu0 %v2622_v62  ;;  %v2625_v62 = vld [vmem:[%s4079_s14 + $0x20] sm:$0xff]  }
 0x3d9   :  { %v1014_v10 = vrot.slane %v1013_v5, 2 }
 0x3db   :  { %v1015_v6 = vadd.f32 %v1014_v10, %v1013_v5 }
 0x3dd   :  { %v1016_v9 = vrot.slane %v1015_v6, 1 }
 0x3df   :  { %v1017_v12 = vadd.f32 %v1016_v9, %v1015_v6 }
 0x3e1   :  { %v3243_v22 = vmul.f32 0.015625, %v1017_v12 }
 0x3e3   :  { %v1019_v24 = vsub.f32 %v3142_v25, %v3243_v22  ;;  %v1020_v27 = vsub.f32 %v3150_v33, %v3243_v22  ;;  %v1021_v34 = vsub.f32 %v3147_v30, %v3243_v22  ;;  %v1022_v42 = vsub.f32 %v3155_v35, %v3243_v22 }
 0x3e4   :  { %v1023_v45 = vsub.f32 %v3168_v47, %v3243_v22  ;;  %v1024_v57 = vsub.f32 %v3176_v54, %v3243_v22  ;;  %v1025_v63 = vsub.f32 %v3171_v51, %v3243_v22  ;;  %v1026_v10 = vsub.f32 %v3181_v31, %v3243_v22 }
 0x3e5   :  { %v1035_v38 = vmul.f32 %v1019_v24, %v3126_v13  ;;  %v1036_v40 = vmul.f32 %v1020_v27, %v3130_v15  ;;  %v1037_v49 = vmul.f32 %v1021_v34, %v3128_v14  ;;  %v1038_v18 = vmul.f32 %v1022_v42, %v3132_v21  ;;  %v2623_v24 = vld [vmem:[%s4079_s14 + $0x10] sm:$0xff]  }
 0x3e6   :  { %v1039_v1 = vmul.f32 %v1023_v45, %v3139_v23  ;;  %v1040_v6 = vmul.f32 %v1024_v57, %v3144_v28  ;;  %v1027_v27 = vsub.f32 %v3192_v0, %v3243_v22  ;;  %v1041_v34 = vmul.f32 %v1025_v63, %v3159_v39  ;;  %2487 = vmatprep.subr.bf16.mxu0 %v2623_v24 }
 0x3e7   :  { %v1051_v50 = vmul.f32 %v1035_v38, %v1035_v38  ;;  %v1052_v53 = vmul.f32 %v1036_v40, %v1036_v40  ;;  %v1053_v3 = vmul.f32 %v1037_v49, %v1037_v49  ;;  %v1054_v9 = vmul.f32 %v1038_v18, %v1038_v18  ;;  %2488 = vmatpush3.bf16.msra.mxu0 %v2623_v24  ;;  %v2626_v24 = vld [vmem:[%s4079_s14 + $0x28] sm:$0xff]  }
 0x3e8   :  { %v1055_v38 = vmul.f32 %v1039_v1, %v1039_v1  ;;  %v1028_v42 = vsub.f32 %v3202_v7, %v3243_v22  ;;  %v1042_v45 = vmul.f32 %v1026_v10, %v3163_v43  ;;  %v1056_v49 = vmul.f32 %v1040_v6, %v1040_v6 }
 0x3e9   :  { %v1067_v5 = vadd.f32 %v1052_v53, %v1051_v50  ;;  %v2624_v53 = vld [vmem:[%s4079_s14 + $0x18] sm:$0xff]   ;;  %v1029_v57 = vsub.f32 %v3197_v4, %v3243_v22  ;;  %v1043_v18 = vmul.f32 %v1027_v27, %v3178_v55  ;;  %v1057_v60 = vmul.f32 %v1041_v34, %v1041_v34 }
 0x3ea   :  { %v1030_v1 = vsub.f32 %v3207_v11, %v3243_v22  ;;  %2489 = vmatprep.subr.bf16.mxu0 %v2624_v53  ;;  %v1031_v6 = vsub.f32 %v3218_v41, %v3243_v22  ;;  %v1032_v34 = vsub.f32 %v3228_v52, %v3243_v22 }
 0x3eb   :  { %v1068_v12 = vadd.f32 %v1067_v5, %v1053_v3  ;;  %v1044_v3 = vmul.f32 %v1028_v42, %v3185_v58  ;;  %v1058_v5 = vmul.f32 %v1042_v45, %v1042_v45  ;;  %2490 = vmatpush3.bf16.msra.mxu0 %v2624_v53  ;;  %v1033_v45 = vsub.f32 %v3223_v46, %v3243_v22  ;;  %v2627_v53 = vld [vmem:[%s4079_s14 + $0x30] sm:$0xff]  }
 0x3ec   :  { %2491 = vmatprep.subr.bf16.mxu0 %v2625_v62 }
 0x3ed   :  { %v1069_v40 = vadd.f32 %v1068_v12, %v1054_v9  ;;  %v1045_v9 = vmul.f32 %v1029_v57, %v3194_v2  ;;  %v1059_v12 = vmul.f32 %v1043_v18, %v1043_v18  ;;  %v1034_v18 = vsub.f32 %v3231_v56, %v3243_v22 }
 0x3ef   :  { %v1070_v50 = vadd.f32 %v1069_v40, %v1055_v38  ;;  %v1046_v38 = vmul.f32 %v1030_v1, %v3204_v8  ;;  %v1060_v40 = vmul.f32 %v1044_v3, %v1044_v3  ;;  %2492 = vmatpush3.bf16.msra.mxu0 %v2625_v62  ;;  %v1049_v3 = vmul.f32 %v1033_v45, %v3235_v59 }
 0x3f0   :  { %2493 = vmatprep.subr.bf16.mxu0 %v2626_v24 }
 0x3f1   :  { %v1071_v63 = vadd.f32 %v1070_v50, %v1056_v49  ;;  %v1047_v49 = vmul.f32 %v1031_v6, %v3213_v29  ;;  %v1061_v50 = vmul.f32 %v1045_v9, %v1045_v9  ;;  %v1050_v6 = vmul.f32 %v1034_v18, %v3239_v61 }
 0x3f3   :  { %v1072_v10 = vadd.f32 %v1071_v63, %v1057_v60  ;;  %v1048_v60 = vmul.f32 %v1032_v34, %v3220_v44  ;;  %v1062_v63 = vmul.f32 %v1046_v38, %v1046_v38  ;;  %2494 = vmatpush3.bf16.msra.mxu0 %v2626_v24  ;;  %v1066_v38 = vmul.f32 %v1050_v6, %v1050_v6  ;;  %v412_v24 = vld [vmem:[%s4077_s12] sm:$0x1]  ;;  %s3576_s12 = scalar_select %p2006_p0, %s3496_s25, 112 }
 0x3f4   :  { %2495 = vmatprep.subr.bf16.mxu0 %v2627_v53 }
 0x3f5   :  { %v1073_v27 = vadd.f32 %v1072_v10, %v1058_v5  ;;  %v1063_v5 = vmul.f32 %v1047_v49, %v1047_v49  ;;  %v1064_v9 = vmul.f32 %v1048_v60, %v1048_v60  ;;  %s4189_s12 = smov (!%p2215_p1, %s3576_s12), 0 }
 0x3f6   :  { %s2010_s26 = scalar_lea.vmem [#allocation2], %s4189_s12 }
 0x3f7   :  { %v1074_v42 = vadd.f32 %v1073_v27, %v1059_v12  ;;  %v1065_v27 = vmul.f32 %v1049_v3, %v1049_v3  ;;  %2496 = vmatpush3.bf16.msra.mxu0 %v2627_v53 }
 0x3f9   :  { %v1075_v57 = vadd.f32 %v1074_v42, %v1060_v40 }
 0x3fb   :  { %v1076_v1 = vadd.f32 %v1075_v57, %v1061_v50 }
 0x3fd   :  { %v1077_v10 = vadd.f32 %v1076_v1, %v1062_v63  ;;  %v413_v1 = vld [vmem:[%s4078_s13] sm:$0x1]  ;;  %s3587_s13 = sld [smem:[#allocation7 + $0x4]] }
 0x3ff   :  { %v1078_v12 = vadd.f32 %v1077_v10, %v1063_v5 }
 0x401   :  { %v1079_v34 = vadd.f32 %v1078_v12, %v1064_v9 }
 0x403   :  { %v1080_v40 = vadd.f32 %v1079_v34, %v1065_v27 }
 0x405   :  { %v1081_v62 = vadd.f32 %v1080_v40, %v1066_v38 }
 0x407   :  { %v1082_v42 = vrot.slane %v1081_v62, 4 }
 0x409   :  { %v1083_v50 = vadd.f32 %v1082_v42, %v1081_v62 }
 0x40b   :  { %v1084_v57 = vrot.slane %v1083_v50, 2 }
 0x40d   :  { %v1085_v26 = vadd.f32 %v1084_v57, %v1083_v50 }
 0x40f   :  { %v1086_v44 = vrot.slane %v1085_v26, 1 }
 0x411   :  { %v1087_v45 = vadd.f32 %v1086_v44, %v1085_v26 }
 0x413   :  { %v1088_v49 = vmul.f32 0.015625, %v1087_v45 }
 0x415   :  { %v1089_v63 = vadd.f32 1e-05, %v1088_v49 }
 0x417   :  { %2637 = vrsqrt.f32 %v1089_v63 }
 0x421   :  { %v2638_v18 = vpop.eup %2637 }
 0x422   :  { %v1091_v60 = vmul.f32 %v2638_v18, %v412_v24 }
 0x424   :  { %v1092_v53 = vmul.f32 %v1091_v60, %v3243_v22  ;;  %v1098_v3 = vrot.slane %v1091_v60, %v2935_v32 }
 0x426   :  { %v1093_v5 = vsub.f32 %v413_v1, %v1092_v53  ;;  %v1100_v26 = vmul.f32 %v1098_v3, %v3142_v25  ;;  %v1101_v10 = vmul.f32 %v1098_v3, %v3150_v33  ;;  %v1102_v6 = vmul.f32 %v1098_v3, %v3147_v30 }
 0x427   :  { %v1103_v9 = vmul.f32 %v1098_v3, %v3155_v35  ;;  %v1104_v12 = vmul.f32 %v1098_v3, %v3168_v47  ;;  %v1105_v27 = vmul.f32 %v1098_v3, %v3176_v54  ;;  %v1106_v33 = vmul.f32 %v1098_v3, %v3171_v51 }
 0x428   :  { %v1120_v44 = vrot.slane %v1093_v5, %v2935_v32  ;;  %v1107_v30 = vmul.f32 %v1098_v3, %v3181_v31  ;;  %v1108_v18 = vmul.f32 %v1098_v3, %v3192_v0  ;;  %v1109_v60 = vmul.f32 %v1098_v3, %v3202_v7 }
 0x429   :  { %v1110_v31 = vmul.f32 %v1098_v3, %v3197_v4  ;;  %v1112_v0 = vmul.f32 %v1098_v3, %v3218_v41  ;;  %v1113_v7 = vmul.f32 %v1098_v3, %v3228_v52  ;;  %v1114_v4 = vmul.f32 %v1098_v3, %v3223_v46  ;;  %v2628_v46 = vld [vmem:[%s4079_s14 + $0x38] sm:$0xff]   ;;  %s3605_s14 = sld [smem:[#allocation7 + $0x5]] }
 0x42a   :  { %v1122_v34 = vadd.f32 %v1120_v44, %v1100_v26  ;;  %v1123_v38 = vadd.f32 %v1120_v44, %v1101_v10  ;;  %v1124_v22 = vadd.f32 %v1120_v44, %v1102_v6  ;;  %v1125_v40 = vadd.f32 %v1120_v44, %v1103_v9  ;;  %2497 = vmatprep.subr.bf16.mxu0 %v2628_v46 }
 0x42b   :  { %v1126_v62 = vadd.f32 %v1120_v44, %v1104_v12  ;;  %v1127_v42 = vadd.f32 %v1120_v44, %v1105_v27  ;;  %v1128_v35 = vadd.f32 %v1120_v44, %v1106_v33  ;;  %v1129_v63 = vadd.f32 %v1120_v44, %v1107_v30  ;;  %2498 = vmatpush3.bf16.msra.mxu0 %v2628_v46 }
 0x42c   :  { %v1138_v50 = vmax.f32 %v1122_v34, 0.0  ;;  %v1139_v25 = vmax.f32 %v1123_v38, 0.0  ;;  %v1140_v57 = vmax.f32 %v1124_v22, 0.0  ;;  %v1141_v45 = vmax.f32 %v1125_v40, 0.0 }
 0x42d   :  { %v1142_v54 = vmax.f32 %v1126_v62, 0.0  ;;  %v1143_v24 = vmax.f32 %v1127_v42, 0.0  ;;  %v1144_v1 = vmax.f32 %v1128_v35, 0.0  ;;  %v1145_v53 = vmax.f32 %v1129_v63, 0.0 }
 0x42e   :  { %v1190_v49 = vpack.c.bf16 %v1139_v25, %v1138_v50  ;;  %v1191_v47 = vpack.c.bf16 %v1141_v45, %v1140_v57  ;;  %v1130_v26 = vadd.f32 %v1120_v44, %v1108_v18  ;;  %v1131_v51 = vadd.f32 %v1120_v44, %v1109_v60 }
 0x42f   :  { %v1192_v5 = vpack.c.bf16 %v1143_v24, %v1142_v54  ;;  %v1111_v10 = vmul.f32 %v1098_v3, %v3207_v11  ;;  %v1193_v6 = vpack.c.bf16 %v1145_v53, %v1144_v1  ;;  %v1132_v27 = vadd.f32 %v1120_v44, %v1110_v31 }
 0x430   :  { %2451 = vmatprep.subr.bf16.mxu1 %v1190_v49  ;;  %v1146_v9 = vmax.f32 %v1130_v26, 0.0  ;;  %v1147_v12 = vmax.f32 %v1131_v51, 0.0  ;;  %v1134_v38 = vadd.f32 %v1120_v44, %v1112_v0  ;;  %v1135_v42 = vadd.f32 %v1120_v44, %v1113_v7  ;;  %v2635_v7 = vld [vmem:[#allocation9 + $0x30] sm:$0xff]  }
 0x431   :  { %2452 = vmatpush3.bf16.msra.mxu1 %v1190_v49  ;;  %v1133_v34 = vadd.f32 %v1120_v44, %v1111_v10  ;;  %v1148_v40 = vmax.f32 %v1132_v27, 0.0  ;;  %v1115_v11 = vmul.f32 %v1098_v3, %v3231_v56  ;;  %v1136_v45 = vadd.f32 %v1120_v44, %v1114_v4  ;;  %v2629_v56 = vld [vmem:[#allocation9] sm:$0xff]  }
 0x432   :  { %2453 = vmatprep.subr.bf16.mxu1 %v1191_v47  ;;  %v1194_v22 = vpack.c.bf16 %v1147_v12, %v1146_v9  ;;  %v1150_v50 = vmax.f32 %v1134_v38, 0.0  ;;  %v1151_v57 = vmax.f32 %v1135_v42, 0.0  ;;  %v2636_v38 = vld [vmem:[#allocation9 + $0x38] sm:$0xff]  }
 0x433   :  { %v1149_v62 = vmax.f32 %v1133_v34, 0.0  ;;  %v1137_v33 = vadd.f32 %v1120_v44, %v1115_v11  ;;  %v1152_v52 = vmax.f32 %v1136_v45, 0.0 }
 0x434   :  { %v1196_v41 = vpack.c.bf16 %v1151_v57, %v1150_v50 }
 0x435   :  { %2454 = vmatpush3.bf16.msra.mxu1 %v1191_v47  ;;  %v1195_v25 = vpack.c.bf16 %v1149_v62, %v1148_v40  ;;  %v1153_v30 = vmax.f32 %v1137_v33, 0.0 }
 0x436   :  { %2455 = vmatprep.subr.bf16.mxu1 %v1192_v5 }
 0x437   :  { %v1197_v49 = vpack.c.bf16 %v1153_v30, %v1152_v52 }
 0x439   :  { %2456 = vmatpush3.bf16.msra.mxu1 %v1192_v5 }
 0x43a   :  { %2457 = vmatprep.subr.bf16.mxu1 %v1193_v6 }
 0x43d   :  { %2458 = vmatpush3.bf16.msra.mxu1 %v1193_v6 }
 0x43e   :  { %2459 = vmatprep.subr.bf16.mxu1 %v1194_v22 }
 0x441   :  { %2460 = vmatpush3.bf16.msra.mxu1 %v1194_v22  ;;  %v2162_v22 = vld [vmem:[%s4080_s15] ss:$0 sm:$0xff]  ;;  %s3657_s15 = scalar_select %p2036_p2, %s3503_s27, 112 }
 0x442   :  { %2461 = vmatprep.subr.bf16.mxu1 %v1195_v25 }
 0x445   :  { %2462 = vmatpush3.bf16.msra.mxu1 %v1195_v25 }
 0x446   :  { %2463 = vmatprep.subr.bf16.mxu1 %v1196_v41 }
 0x449   :  { %2464 = vmatpush3.bf16.msra.mxu1 %v1196_v41 }
 0x44a   :  { %2465 = vmatprep.subr.bf16.mxu1 %v1197_v49 }
 0x44d   :  { %2466 = vmatpush3.bf16.msra.mxu1 %v1197_v49 }
 0x44e   :  { %2515 = vmatprep.subr.bf16.mxu1 %v2629_v56 }
 0x450   :  { %2468 = vmatmul.mubr.bf16.vlgmr.msra.gmra.mrb[16].mxu1 %v3008_v16  ;;  %v2630_v16 = vld [vmem:[#allocation9 + $0x8] sm:$0xff]  }
 0x451   :  { %2471 = vmatprep.mubr.bf16.mxu1 %v3013_v17  ;;  %2516 = vmatpush3.bf16.msra.mxu1 %v2629_v56  ;;  %v2631_v17 = vld [vmem:[#allocation9 + $0x10] sm:$0xff]  }
 0x452   :  { %2517 = vmatprep.subr.bf16.mxu1 %v2630_v16 }
 0x455   :  { %2518 = vmatpush3.bf16.msra.mxu1 %v2630_v16 }
 0x456   :  { %2519 = vmatprep.subr.bf16.mxu1 %v2631_v17 }
 0x458   :  { %2472 = vmatmul.mubr.bf16.gmra.mrb[20].mxu1 %v3020_v36  ;;  %v2632_v36 = vld [vmem:[#allocation9 + $0x18] sm:$0xff]  }
 0x459   :  { %2475 = vmatprep.mubr.bf16.mxu1 %v3025_v37  ;;  %2520 = vmatpush3.bf16.msra.mxu1 %v2631_v17  ;;  %v2633_v37 = vld [vmem:[#allocation9 + $0x20] sm:$0xff]  }
 0x45a   :  { %2521 = vmatprep.subr.bf16.mxu1 %v2632_v36 }
 0x45d   :  { %2522 = vmatpush3.bf16.msra.mxu1 %v2632_v36 }
 0x45e   :  { %2523 = vmatprep.subr.bf16.mxu1 %v2633_v37 }
 0x460   :  { %2476 = vmatmul.mubr.bf16.gmra.mrb[24].mxu1 %v3032_v48  ;;  %v2634_v48 = vld [vmem:[#allocation9 + $0x28] sm:$0xff]  }
 0x461   :  { %2479 = vmatprep.mubr.bf16.mxu1 %v3037_v19  ;;  %2524 = vmatpush3.bf16.msra.mxu1 %v2633_v37 }
 0x462   :  { %2525 = vmatprep.subr.bf16.mxu1 %v2634_v48 }
 0x465   :  { %2526 = vmatpush3.bf16.msra.mxu1 %v2634_v48 }
 0x466   :  { %2527 = vmatprep.subr.bf16.mxu1 %v2635_v7 }
 0x468   :  { %2480 = vmatmul.mubr.bf16.gmra.mrb[28].mxu1 %v3044_v20 }
 0x469   :  { %2528 = vmatpush3.bf16.msra.mxu1 %v2635_v7 }
 0x46a   :  { %2529 = vmatprep.subr.bf16.mxu1 %v2636_v38 }
 0x46d   :  { %2530 = vmatpush3.bf16.msra.mxu1 %v2636_v38 }
 0x523   :  { %v2469_v19 = vpop.f32.mrb[16].mxu1 }
 0x524   :  { %v1232_v20 = vpop.f32.mrb[17].mxu1 }
 0x525   :  { %v2470_v3 = vpop.f32.mrb[18].mxu1 }
 0x526   :  { %v1296_v44 = vpack.c.bf16 %v2470_v3, %v2469_v19  ;;  %v1235_v35 = vpop.f32.mrb[19].mxu1 }
 0x527   :  { %v1295_v63 = vpack.c.bf16 %v1235_v35, %v1232_v20 }
 0x529   :  { %2499 = vmatprep.mubr.bf16.mxu0 %v1295_v63 }
 0x52a   :  { %2500 = vmatmul.mubr.bf16.vlgmr.msra.gmra.mrb[32].mxu0 %v1296_v44 }
 0x52b   :  { %v2473_v47 = vpop.f32.mrb[20].mxu1 }
 0x52c   :  { %v1248_v54 = vpop.f32.mrb[21].mxu1 }
 0x52d   :  { %v2474_v24 = vpop.f32.mrb[22].mxu1 }
 0x52e   :  { %v1298_v18 = vpack.c.bf16 %v2474_v24, %v2473_v47  ;;  %v1251_v60 = vpop.f32.mrb[23].mxu1 }
 0x52f   :  { %v1297_v1 = vpack.c.bf16 %v1251_v60, %v1248_v54 }
 0x531   :  { %2503 = vmatprep.mubr.bf16.mxu0 %v1297_v1 }
 0x532   :  { %2504 = vmatmul.mubr.bf16.gmra.mrb[36].mxu0 %v1298_v18 }
 0x533   :  { %v2477_v53 = vpop.f32.mrb[24].mxu1 }
 0x534   :  { %v1264_v5 = vpop.f32.mrb[25].mxu1 }
 0x535   :  { %v2478_v26 = vpop.f32.mrb[26].mxu1 }
 0x536   :  { %v1300_v51 = vpack.c.bf16 %v2478_v26, %v2477_v53  ;;  %v1267_v31 = vpop.f32.mrb[27].mxu1 }
 0x537   :  { %v1299_v10 = vpack.c.bf16 %v1267_v31, %v1264_v5 }
 0x539   :  { %2507 = vmatprep.mubr.bf16.mxu0 %v1299_v10 }
 0x53a   :  { %2508 = vmatmul.mubr.bf16.gmra.mrb[40].mxu0 %v1300_v51 }
 0x53b   :  { %v2481_v6 = vpop.f32.mrb[28].mxu1 }
 0x53c   :  { %v1280_v9 = vpop.f32.mrb[29].mxu1 }
 0x53d   :  { %v2482_v12 = vpop.f32.mrb[30].mxu1 }
 0x53e   :  { %v1302_v27 = vpack.c.bf16 %v2482_v12, %v2481_v6  ;;  %v1283_v34 = vpop.f32.mrb[31].mxu1 }
 0x53f   :  { %v1301_v0 = vpack.c.bf16 %v1283_v34, %v1280_v9 }
 0x541   :  { %2511 = vmatprep.mubr.bf16.mxu0 %v1301_v0 }
 0x542   :  { %2512 = vmatmul.mubr.bf16.gmra.mrb[44].mxu0 %v1302_v27 }
 0x5fd   :  { %v2501_v40 = vpop.f32.mrb[32].mxu0 }
 0x5fe   :  { %v1400_v62 = vadd.f32 %v2501_v40, %v2162_v22  ;;  %v1391_v42 = vpop.f32.mrb[33].mxu0 }
 0x5ff   :  { %v1392_v4 = vadd.f32 %v2162_v22, %v1391_v42  ;;  %v2502_v11 = vpop.f32.mrb[34].mxu0 }
 0x600   :  { %v1403_v50 = vadd.f32 %v2502_v11, %v2162_v22  ;;  %v1394_v25 = vpop.f32.mrb[35].mxu0  ;;  %v1456_v45 = vmax.f32 %v1400_v62, 0.0 }
 0x601   :  { %v1395_v57 = vadd.f32 %v2162_v22, %v1394_v25  ;;  %v1454_v41 = vmax.f32 %v1392_v4, 0.0 }
 0x602   :  { %v1457_v33 = vmax.f32 %v1403_v50, 0.0 }
 0x603   :  { %v1455_v52 = vmax.f32 %v1395_v57, 0.0 }
 0x604   :  { %v1471_v30 = vpack.c.bf16 %v1457_v33, %v1456_v45  ;;  %v2171_v33 = vld [vmem:[%s4082_s17] ss:$0 sm:$0xff]  ;;  %s3471_s17 = sld [smem:[#allocation3]] }
 0x605   :  { %v1470_v49 = vpack.c.bf16 %v1455_v52, %v1454_v41  ;;  %v2505_v46 = vpop.f32.mrb[36].mxu0 }
 0x606   :  { %v1416_v56 = vadd.f32 %v2505_v46, %v2162_v22  ;;  %v1407_v16 = vpop.f32.mrb[37].mxu0 }
 0x607   :  { %v1408_v17 = vadd.f32 %v2162_v22, %v1407_v16  ;;  %v2506_v36 = vpop.f32.mrb[38].mxu0  ;;  %2531 = vmatprep.mubr.bf16.mxu1 %v1470_v49  ;;  %v2724_v16 = vmov 0.0  }
 0x608   :  { %v1419_v37 = vadd.f32 %v2506_v36, %v2162_v22  ;;  %v1410_v48 = vpop.f32.mrb[39].mxu0  ;;  %2532 = vmatmul.mubr.bf16.vlgmr.msra.gmra.mrb[32].mxu1 %v1471_v30  ;;  %v1460_v20 = vmax.f32 %v1416_v56, 0.0  ;;  %2547 = vmatprep.subr.bf16.mxu0 %v2724_v16 }
 0x609   :  { %v1411_v19 = vadd.f32 %v2162_v22, %v1410_v48  ;;  %v1458_v44 = vmax.f32 %v1408_v17, 0.0  ;;  %2563 = vmatprep.mubr.msk.bf16.mxu0 %vm2725_vm0, %v2724_v16 }
 0x60a   :  { %v1461_v3 = vmax.f32 %v1419_v37, 0.0  ;;  %p1853_p4 = scmp.lt.s32.totalorder %s3471_s17, 112  ;;  %p2180_p6 = scmp.gt.s32.totalorder %s3471_s17, 0 }
 0x60b   :  { %v1459_v35 = vmax.f32 %v1411_v19, 0.0  ;;  %s1869_s4 = sadd.s32 %s3488_s24, %s3471_s17  ;;  %s1989_s24 = sadd.s32 %s3587_s13, %s3486_s23 }
 0x60c   :  { %v1473_v63 = vpack.c.bf16 %v1461_v3, %v1460_v20  ;;  %s1854_s11 = scalar_select %p1853_p4, %s3471_s17, 112 }
 0x60d   :  { %v1472_v47 = vpack.c.bf16 %v1459_v35, %v1458_v44  ;;  %v2509_v54 = vpop.f32.mrb[40].mxu0  ;;  %p2222_p4 = scmp.gt.s32.totalorder %s3503_s27, 0 }
 0x60e   :  { %v1432_v24 = vadd.f32 %v2509_v54, %v2162_v22  ;;  %v1423_v18 = vpop.f32.mrb[41].mxu0  ;;  %s4179_s11 = smov (!%p2180_p6, %s1854_s11), 0 }
 0x60f   :  { %v1424_v60 = vadd.f32 %v2162_v22, %v1423_v18  ;;  %v2510_v1 = vpop.f32.mrb[42].mxu0  ;;  %2535 = vmatprep.mubr.bf16.mxu1 %v1472_v47  ;;  %s4191_s15 = smov (!%p2222_p4, %s3657_s15), 0 }
 0x610   :  { %v1435_v53 = vadd.f32 %v2510_v1, %v2162_v22  ;;  %v1426_v5 = vpop.f32.mrb[43].mxu0  ;;  %2536 = vmatmul.mubr.bf16.gmra.mrb[36].mxu1 %v1473_v63  ;;  %v1464_v51 = vmax.f32 %v1432_v24, 0.0 }
 0x611   :  { %v1427_v26 = vadd.f32 %v2162_v22, %v1426_v5  ;;  %v1462_v10 = vmax.f32 %v1424_v60, 0.0 }
 0x612   :  { %v1465_v31 = vmax.f32 %v1435_v53, 0.0 }
 0x613   :  { %v1463_v6 = vmax.f32 %v1427_v26, 0.0 }
 0x614   :  { %v1475_v9 = vpack.c.bf16 %v1465_v31, %v1464_v51 }
 0x615   :  { %v1474_v12 = vpack.c.bf16 %v1463_v6, %v1462_v10  ;;  %v2513_v27 = vpop.f32.mrb[44].mxu0 }
 0x616   :  { %v1448_v34 = vadd.f32 %v2513_v27, %v2162_v22  ;;  %v1439_v0 = vpop.f32.mrb[45].mxu0 }
 0x617   :  { %v1440_v7 = vadd.f32 %v2162_v22, %v1439_v0  ;;  %v2514_v38 = vpop.f32.mrb[46].mxu0  ;;  %2539 = vmatprep.mubr.bf16.mxu1 %v1474_v12 }
 0x618   :  { %v1451_v40 = vadd.f32 %v2514_v38, %v2162_v22  ;;  %v1442_v62 = vpop.f32.mrb[47].mxu0  ;;  %2540 = vmatmul.mubr.bf16.gmra.mrb[40].mxu1 %v1475_v9  ;;  %v1468_v4 = vmax.f32 %v1448_v34, 0.0 }
 0x619   :  { %v1443_v42 = vadd.f32 %v2162_v22, %v1442_v62  ;;  %v1466_v50 = vmax.f32 %v1440_v7, 0.0 }
 0x61a   :  { %v1469_v11 = vmax.f32 %v1451_v40, 0.0 }
 0x61b   :  { %v1467_v25 = vmax.f32 %v1443_v42, 0.0 }
 0x61c   :  { %v1477_v57 = vpack.c.bf16 %v1469_v11, %v1468_v4 }
 0x61d   :  { %v1476_v45 = vpack.c.bf16 %v1467_v25, %v1466_v50 }
 0x61f   :  { %2543 = vmatprep.mubr.bf16.mxu1 %v1476_v45 }
 0x620   :  { %2544 = vmatmul.mubr.bf16.gmra.mrb[44].mxu1 %v1477_v57 }
 0x6db   :  { %v2533_v41 = vpop.f32.mrb[32].mxu1 }
 0x6dc   :  { %v1566_v52 = vpop.f32.mrb[33].mxu1  ;;  %v3357_v56 = vadd.f32 %v2533_v41, %v2171_v33 }
 0x6dd   :  { %v3355_v30 = vadd.f32 %v2171_v33, %v1566_v52  ;;  %v2534_v49 = vpop.f32.mrb[34].mxu1 }
 0x6de   :  { %v1569_v46 = vpop.f32.mrb[35].mxu1  ;;  %v3364_v36 = vadd.f32 %v2534_v49, %v2171_v33  ;;  %v1631_v48 = vmul.f32 %v3357_v56, %v3128_v14 }
 0x6df   :  { %v3359_v22 = vadd.f32 %v2171_v33, %v1569_v46  ;;  %v1629_v17 = vmul.f32 %v3355_v30, %v3126_v13 }
 0x6e0   :  { %v1632_v44 = vmul.f32 %v3364_v36, %v3132_v21 }
 0x6e1   :  { %v1630_v37 = vmul.f32 %v3359_v22, %v3130_v15 }
 0x6e3   :  { %v1645_v19 = vadd.f32 %v1630_v37, %v1629_v17  ;;  %v2537_v20 = vpop.f32.mrb[36].mxu1 }
 0x6e4   :  { %v1582_v3 = vpop.f32.mrb[37].mxu1  ;;  %v3374_v24 = vadd.f32 %v2537_v20, %v2171_v33 }
 0x6e5   :  { %v1646_v35 = vadd.f32 %v1645_v19, %v1631_v48  ;;  %v3372_v63 = vadd.f32 %v2171_v33, %v1582_v3  ;;  %v2538_v47 = vpop.f32.mrb[38].mxu1 }
 0x6e6   :  { %v1585_v54 = vpop.f32.mrb[39].mxu1  ;;  %v3380_v5 = vadd.f32 %v2538_v47, %v2171_v33  ;;  %v1635_v51 = vmul.f32 %v3374_v24, %v3159_v39 }
 0x6e7   :  { %v1633_v18 = vmul.f32 %v3372_v63, %v3139_v23  ;;  %v1647_v60 = vadd.f32 %v1646_v35, %v1632_v44  ;;  %v3378_v1 = vadd.f32 %v2171_v33, %v1585_v54  ;;  %v4104_v35 = vld [vmem:[#allocation16_spill] sm:$0xff] }
 0x6e8   :  { %v1636_v9 = vmul.f32 %v3380_v5, %v3163_v43 }
 0x6e9   :  { %v1648_v53 = vadd.f32 %v1647_v60, %v1633_v18  ;;  %v1634_v26 = vmul.f32 %v3378_v1, %v3144_v28 }
 0x6eb   :  { %v1649_v31 = vadd.f32 %v1648_v53, %v1634_v26  ;;  %v2541_v10 = vpop.f32.mrb[40].mxu1 }
 0x6ec   :  { %v1598_v6 = vpop.f32.mrb[41].mxu1  ;;  %v3390_v7 = vadd.f32 %v2541_v10, %v2171_v33 }
 0x6ed   :  { %v1650_v12 = vadd.f32 %v1649_v31, %v1635_v51  ;;  %v3388_v27 = vadd.f32 %v2171_v33, %v1598_v6  ;;  %v2542_v34 = vpop.f32.mrb[42].mxu1 }
 0x6ee   :  { %v1601_v0 = vpop.f32.mrb[43].mxu1  ;;  %v3396_v4 = vadd.f32 %v2542_v34, %v2171_v33  ;;  %v1639_v50 = vmul.f32 %v3390_v7, %v3194_v2 }
 0x6ef   :  { %v1637_v38 = vmul.f32 %v3388_v27, %v3178_v55  ;;  %v1651_v40 = vadd.f32 %v1650_v12, %v1636_v9  ;;  %v3394_v62 = vadd.f32 %v2171_v33, %v1601_v0 }
 0x6f0   :  { %v1640_v41 = vmul.f32 %v3396_v4, %v3204_v8 }
 0x6f1   :  { %v1652_v42 = vadd.f32 %v1651_v40, %v1637_v38  ;;  %v1638_v11 = vmul.f32 %v3394_v62, %v3185_v58 }
 0x6f3   :  { %v1653_v25 = vadd.f32 %v1652_v42, %v1638_v11  ;;  %v2545_v57 = vpop.f32.mrb[44].mxu1 }
 0x6f4   :  { %v1614_v45 = vpop.f32.mrb[45].mxu1  ;;  %v3406_v37 = vadd.f32 %v2545_v57, %v2171_v33 }
 0x6f5   :  { %v1654_v52 = vadd.f32 %v1653_v25, %v1639_v50  ;;  %v3404_v49 = vadd.f32 %v2171_v33, %v1614_v45  ;;  %v2546_v46 = vpop.f32.mrb[46].mxu1 }
 0x6f6   :  { %v1617_v17 = vpop.f32.mrb[47].mxu1  ;;  %v3412_v44 = vadd.f32 %v2546_v46, %v2171_v33  ;;  %v1643_v54 = vmul.f32 %v3406_v37, %v3235_v59 }
 0x6f7   :  { %v1641_v48 = vmul.f32 %v3404_v49, %v3213_v29  ;;  %v1655_v19 = vadd.f32 %v1654_v52, %v1640_v41  ;;  %v3410_v20 = vadd.f32 %v2171_v33, %v1617_v17 }
 0x6f8   :  { %v1644_v60 = vmul.f32 %v3412_v44, %v3239_v61 }
 0x6f9   :  { %v1656_v3 = vadd.f32 %v1655_v19, %v1641_v48  ;;  %v1642_v47 = vmul.f32 %v3410_v20, %v4104_v35 }
 0x6fb   :  { %v1657_v18 = vadd.f32 %v1656_v3, %v1642_v47 }
 0x6fd   :  { %v1658_v53 = vadd.f32 %v1657_v18, %v1643_v54 }
 0x6ff   :  { %v1659_v26 = vadd.f32 %v1658_v53, %v1644_v60 }
 0x701   :  { %v1660_v51 = vrot.slane %v1659_v26, 4 }
 0x703   :  { %v1661_v31 = vadd.f32 %v1660_v51, %v1659_v26 }
 0x705   :  { %v1662_v10 = vrot.slane %v1661_v31, 2 }
 0x707   :  { %v1663_v33 = vadd.f32 %v1662_v10, %v1661_v31 }
 0x709   :  { %v1664_v6 = vrot.slane %v1663_v33, 1 }
 0x70b   :  { %v1665_v9 = vadd.f32 %v1664_v6, %v1663_v33 }
 0x70d   :  { %v3421_v12 = vmul.f32 0.015625, %v1665_v9 }
 0x70f   :  { %v1667_v34 = vsub.f32 %v3355_v30, %v3421_v12  ;;  %v1668_v0 = vsub.f32 %v3359_v22, %v3421_v12  ;;  %v1669_v38 = vsub.f32 %v3357_v56, %v3421_v12  ;;  %v1670_v11 = vsub.f32 %v3364_v36, %v3421_v12 }
 0x710   :  { %v1671_v50 = vsub.f32 %v3372_v63, %v3421_v12  ;;  %v1672_v41 = vsub.f32 %v3378_v1, %v3421_v12  ;;  %v1674_v48 = vsub.f32 %v3380_v5, %v3421_v12  ;;  %v1675_v47 = vsub.f32 %v3388_v27, %v3421_v12 }
 0x711   :  { %v1683_v40 = vmul.f32 %v1667_v34, %v3126_v13  ;;  %v1684_v42 = vmul.f32 %v1668_v0, %v3130_v15  ;;  %v1685_v25 = vmul.f32 %v1669_v38, %v3128_v14  ;;  %v1686_v52 = vmul.f32 %v1670_v11, %v3132_v21 }
 0x712   :  { %v1673_v13 = vsub.f32 %v3374_v24, %v3421_v12  ;;  %v1687_v15 = vmul.f32 %v1671_v50, %v3139_v23  ;;  %v1688_v19 = vmul.f32 %v1672_v41, %v3144_v28  ;;  %v1676_v60 = vsub.f32 %v3394_v62, %v3421_v12 }
 0x713   :  { %v1699_v57 = vmul.f32 %v1683_v40, %v1683_v40  ;;  %v1700_v45 = vmul.f32 %v1684_v42, %v1684_v42  ;;  %v1701_v46 = vmul.f32 %v1685_v25, %v1685_v25  ;;  %v1702_v14 = vmul.f32 %v1686_v52, %v1686_v52 }
 0x714   :  { %v1689_v54 = vmul.f32 %v1673_v13, %v3159_v39  ;;  %v1703_v21 = vmul.f32 %v1687_v15, %v1687_v15  ;;  %v1690_v23 = vmul.f32 %v1674_v48, %v3163_v43  ;;  %v1704_v53 = vmul.f32 %v1688_v19, %v1688_v19 }
 0x715   :  { %v1715_v17 = vadd.f32 %v1700_v45, %v1699_v57  ;;  %v1677_v51 = vsub.f32 %v3390_v7, %v3421_v12  ;;  %v1691_v28 = vmul.f32 %v1675_v47, %v3178_v55  ;;  %v1678_v33 = vsub.f32 %v3396_v4, %v3421_v12 }
 0x716   :  { %v1705_v31 = vmul.f32 %v1689_v54, %v1689_v54  ;;  %v1692_v39 = vmul.f32 %v1676_v60, %v3185_v58  ;;  %v1706_v6 = vmul.f32 %v1690_v23, %v1690_v23  ;;  %v1679_v34 = vsub.f32 %v3404_v49, %v3421_v12 }
 0x717   :  { %v1716_v3 = vadd.f32 %v1715_v17, %v1701_v46  ;;  %v1693_v43 = vmul.f32 %v1677_v51, %v3194_v2  ;;  %v1707_v0 = vmul.f32 %v1691_v28, %v1691_v28  ;;  %v1680_v40 = vsub.f32 %v3410_v20, %v3421_v12  ;;  %v1188_v28 = vld [vmem:[%s4083_s18] sm:$0x1] }
 0x718   :  { %v1694_v55 = vmul.f32 %v1678_v33, %v3204_v8  ;;  %v1708_v42 = vmul.f32 %v1692_v39, %v1692_v39  ;;  %v1681_v50 = vsub.f32 %v3406_v37, %v3421_v12  ;;  %v1695_v58 = vmul.f32 %v1679_v34, %v3213_v29  ;;  %v1189_v34 = vld [vmem:[%s4084_s19] sm:$0x1]  ;;  %s3560_s19 = sld [smem:[#allocation7 + $0x3]] }
 0x719   :  { %v1717_v18 = vadd.f32 %v1716_v3, %v1702_v14  ;;  %v1709_v25 = vmul.f32 %v1693_v43, %v1693_v43  ;;  %v1682_v45 = vsub.f32 %v3412_v44, %v3421_v12  ;;  %v1696_v2 = vmul.f32 %v1680_v40, %v4104_v35 }
 0x71a   :  { %v1710_v41 = vmul.f32 %v1694_v55, %v1694_v55  ;;  %v1697_v13 = vmul.f32 %v1681_v50, %v3235_v59  ;;  %v1711_v15 = vmul.f32 %v1695_v58, %v1695_v58  ;;  %v1863_v51 = vstv %s4179_s11 }
 0x71b   :  { %v1718_v26 = vadd.f32 %v1717_v18, %v1703_v21  ;;  %v1698_v46 = vmul.f32 %v1682_v45, %v3239_v61  ;;  %v1712_v17 = vmul.f32 %v1696_v2, %v1696_v2  ;;  %v1896_v55 = vstv %s3473_s1  ;;  %s3694_s1 = sld [smem:[#allocation7 + $0x7]] }
 0x71c   :  { %v1713_v19 = vmul.f32 %v1697_v13, %v1697_v13  ;;  %v3558_v50 = vstv %s1929_s29  ;;  %v1986_v13 = vstv %s3486_s23  ;;  %v1990_v2 = vstv %s1989_s24  ;;  %s1857_s23 = scalar_lea.vmem [#allocation2], %s4179_s11  ;;  %s1920_s11 = scalar_lea.vmem [#allocation2], %s4183_s2 }
 0x71d   :  { %v1719_v10 = vadd.f32 %v1718_v26, %v1704_v53  ;;  %v1714_v29 = vmul.f32 %v1698_v46, %v1698_v46  ;;  %v4105_v53 = vld [vmem:[#allocation15_spill] sm:$0xff] }
 0x71e   :  { %v3514_v26 = vadd.s32 8, %v4105_v53  ;;  %v3532_v33 = vadd.s32 %v1863_v51, %v4105_v53 }
 0x71f   :  { %v1720_v9 = vadd.f32 %v1719_v10, %v1705_v31  ;;  %v1893_v31 = vstv %s4181_s22 }
 0x720   :  { %v3535_v39 = vadd.s32 %v1863_v51, %v3514_v26  ;;  %v3552_v40 = vadd.s32 %v1893_v31, %v3514_v26 }
 0x721   :  { %v1721_v38 = vadd.f32 %v1720_v9, %v1706_v6  ;;  %v1866_v6 = vstv %s3471_s17  ;;  %v1923_v9 = vstv %s4183_s2  ;;  %s1959_s17 = sadd.s32 %s3560_s19, %s3479_s28  ;;  %s2079_s3 = sadd.s32 %s3694_s1, %s3526_s10 }
 0x722   :  { %v3571_v45 = vadd.s32 %v1923_v9, %v3514_v26  ;;  %vm3579_vm1 = vcmp.ge.s32.totalorder %v3532_v33, %v1866_v6  ;;  %vm3599_vm3 = vcmp.ge.s32.totalorder %v3535_v39, %v1866_v6  ;;  %vm3635_vm7 = vcmp.ge.s32.totalorder %v3552_v40, %v1896_v55  ;;  %s1980_s2 = scalar_lea.vmem [#allocation2], %s4187_s0 }
 0x723   :  { %v1722_v11 = vadd.f32 %v1721_v38, %v1707_v0  ;;  %v3546_v0 = vstv %s1869_s4  ;;  %v3549_v38 = vadd.s32 %v1893_v31, %v4105_v53 }
 0x724   :  { %vm1871_vm2 = vcmp.lt.s32.totalorder %v3532_v33, %v3546_v0  ;;  %vm1872_vm4 = vcmp.lt.s32.totalorder %v3535_v39, %v3546_v0  ;;  %vm1932_vm14 = vcmp.lt.s32.totalorder %v3571_v45, %v3558_v50 }
 0x725   :  { %v1723_v57 = vadd.f32 %v1722_v11, %v1708_v42  ;;  %v3555_v42 = vstv %s1899_s30  ;;  %v1926_v11 = vstv %s3475_s9  ;;  %vm3616_vm5 = vcmp.ge.s32.totalorder %v3549_v38, %v1896_v55  ;;  %vm3763_vm11 = vmand %vm3579_vm1, %vm1871_vm2  ;;  %s2019_s9 = sadd.s32 %s3605_s14, %s3496_s25  ;;  %s2116_s30 = sshll.u32 %s2726_s16, 4  ;;  %s2117_s30 = int_to_ptr.vmem [resolvable:$true] %s2116_s30 }
 0x726   :  { %vm1901_vm6 = vcmp.lt.s32.totalorder %v3549_v38, %v3555_v42  ;;  %vm1902_vm8 = vcmp.lt.s32.totalorder %v3552_v40, %v3555_v42  ;;  %vm3742_vm10 = vcmp.ge.s32.totalorder %v3571_v45, %v1926_v11  ;;  %vm3779_vm12 = vmand %vm3599_vm3, %vm1872_vm4  ;;  %v2043_v38 = vstv %s4191_s15  ;;  %p2692_p7 = scmp.lt.s32.totalorder %s2117_s30, %s2117_s30 }
 0x727   :  { %v1724_v52 = vadd.f32 %v1723_v57, %v1709_v25  ;;  %v3568_v57 = vadd.s32 %v1923_v9, %v4105_v53  ;;  %vm3793_vm15 = vmand %vm3616_vm5, %vm1901_vm6 }
 0x728   :  { %vm3820_vm2 = vmand %vm3635_vm7, %vm1902_vm8 }
 0x729   :  { %v1725_v8 = vadd.f32 %v1724_v52, %v1710_v41  ;;  %v1956_v41 = vstv %s3479_s28  ;;  %v1983_v52 = vstv %s4187_s0  ;;  %vm3708_vm9 = vcmp.ge.s32.totalorder %v3568_v57, %v1926_v11  ;;  %s2049_s28 = sadd.s32 %s3622_s21, %s3503_s27  ;;  %vm3859_vm8 = vmand %vm3742_vm10, %vm1932_vm14 }
 0x72a   :  { %v1984_v55 = vadd.s32 %v1983_v52, %v4105_v53  ;;  %vm1931_vm13 = vcmp.lt.s32.totalorder %v3568_v57, %v3558_v50  ;;  %v4136_v57 = vmov 0  ;;  %v4138_v50 = vmov 0 }
 0x72b   :  { %v1726_v48 = vadd.f32 %v1725_v8, %v1711_v15  ;;  %vm3835_vm5 = vmand %vm3708_vm9, %vm1931_vm13  ;;  %v4137_v57 = vsel %vm3859_vm8, 4294967295, %v4136_v57  ;;  %v2050_v45 = vstv %s2049_s28 }
 0x72c   :  { %vm3841_vm6 = vcmp.ge.s32.totalorder %v1984_v55, %v1986_v13  ;;  %vm1991_vm9 = vcmp.lt.s32.totalorder %v1984_v55, %v1990_v2 }
 0x72d   :  { %v1727_v14 = vadd.f32 %v1726_v48, %v1712_v17 }
 0x72f   :  { %v1728_v3 = vadd.f32 %v1727_v14, %v1713_v19 }
 0x731   :  { %v1729_v59 = vadd.f32 %v1728_v3, %v1714_v29  ;;  %v4144_v29 = vmov 0 }
 0x733   :  { %v1730_v35 = vrot.slane %v1729_v59, 4 }
 0x735   :  { %v1731_v47 = vadd.f32 %v1730_v35, %v1729_v59 }
 0x737   :  { %v1732_v61 = vrot.slane %v1731_v47, 2 }
 0x739   :  { %v1733_v54 = vadd.f32 %v1732_v61, %v1731_v47 }
 0x73b   :  { %v1734_v21 = vrot.slane %v1733_v54, 1 }
 0x73d   :  { %v1735_v18 = vadd.f32 %v1734_v21, %v1733_v54 }
 0x73f   :  { %v1736_v60 = vmul.f32 0.015625, %v1735_v18 }
 0x741   :  { %v1737_v23 = vadd.f32 1e-05, %v1736_v60 }
 0x743   :  { %2639 = vrsqrt.f32 %v1737_v23 }
 0x74d   :  { %v2640_v10 = vpop.eup %2639 }
 0x74e   :  { %v1739_v43 = vmul.f32 %v2640_v10, %v1188_v28  ;;  %v2016_v28 = vstv %s3496_s25  ;;  %s1890_s25 = scalar_lea.vmem [#allocation2], %s4181_s22  ;;  %s1950_s22 = scalar_lea.vmem [#allocation2], %s4185_s6 }
 0x750   :  { %v1740_v58 = vmul.f32 %v1739_v43, %v3421_v12  ;;  %v3565_v25 = vrot.slane %v1739_v43, %v2935_v32  ;;  %v1953_v12 = vstv %s4185_s6  ;;  %v1960_v43 = vstv %s1959_s17  ;;  %s2070_s6 = scalar_lea.vmem [#allocation2], %s4193_s5 }
 0x751   :  { %v1954_v6 = vadd.s32 %v1953_v12, %v4105_v53  ;;  %v1955_v9 = vadd.s32 %v1953_v12, %v3514_v26  ;;  %v2013_v12 = vstv %s4189_s12 }
 0x752   :  { %v1741_v15 = vsub.f32 %v1189_v34, %v1740_v58  ;;  %v1761_v8 = vmul.f32 %v3565_v25, %v3410_v20  ;;  %v1748_v46 = vmul.f32 %v3565_v25, %v3355_v30  ;;  %v1749_v17 = vmul.f32 %v3565_v25, %v3359_v22 }
 0x753   :  { %v1750_v20 = vmul.f32 %v3565_v25, %v3357_v56  ;;  %v1751_v30 = vmul.f32 %v3565_v25, %v3364_v36  ;;  %v1752_v22 = vmul.f32 %v3565_v25, %v3372_v63  ;;  %v1753_v19 = vmul.f32 %v3565_v25, %v3378_v1 }
 0x754   :  { %v3626_v56 = vrot.slane %v1741_v15, %v2935_v32  ;;  %v1754_v36 = vmul.f32 %v3565_v25, %v3374_v24  ;;  %v1755_v63 = vmul.f32 %v3565_v25, %v3380_v5  ;;  %v1756_v1 = vmul.f32 %v3565_v25, %v3388_v27 }
 0x755   :  { %v1757_v32 = vmul.f32 %v3565_v25, %v3394_v62  ;;  %v1758_v24 = vmul.f32 %v3565_v25, %v3390_v7  ;;  %v1759_v5 = vmul.f32 %v3565_v25, %v3396_v4  ;;  %v1760_v27 = vmul.f32 %v3565_v25, %v3404_v49 }
 0x756   :  { %v3660_v3 = vadd.f32 %v3626_v56, %v1761_v8  ;;  %v1770_v59 = vadd.f32 %v3626_v56, %v1748_v46  ;;  %v1771_v35 = vadd.f32 %v3626_v56, %v1749_v17  ;;  %v1772_v62 = vadd.f32 %v3626_v56, %v1750_v20 }
 0x757   :  { %v1773_v7 = vadd.f32 %v3626_v56, %v1751_v30  ;;  %v3669_v4 = vadd.f32 %v3626_v56, %v1752_v22  ;;  %v3672_v49 = vadd.f32 %v3626_v56, %v1753_v19  ;;  %v3675_v47 = vadd.f32 %v3626_v56, %v1754_v36 }
 0x758   :  { %1799 = vst [vmem:[#allocation2 + $0x68] sm:$0xff] %v3660_v3  ;;  %1786 = vst [vmem:[#allocation2] sm:$0xff] %v1770_v59  ;;  %v1803_v61 = vpack.c.bf16 %v1771_v35, %v1770_v59  ;;  %v3684_v54 = vadd.f32 %v3626_v56, %v1755_v63  ;;  %v3687_v21 = vadd.f32 %v3626_v56, %v1756_v1  ;;  %v2046_v8 = vstv %s3503_s27  ;;  %s2040_s27 = scalar_lea.vmem [#allocation2], %s4191_s15 }
 0x759   :  { %1787 = vst [vmem:[#allocation2 + $0x8] sm:$0xff] %v1771_v35  ;;  %1788 = vst [vmem:[#allocation2 + $0x10] sm:$0xff] %v1772_v62  ;;  %v3690_v18 = vadd.f32 %v3626_v56, %v1757_v32  ;;  %v3700_v60 = vadd.f32 %v3626_v56, %v1758_v24  ;;  %v3703_v23 = vadd.f32 %v3626_v56, %v1759_v5  ;;  %v2073_v17 = vstv %s4193_s5 }
 0x75a   :  { %1789 = vst [vmem:[#allocation2 + $0x18] sm:$0xff] %v1773_v7  ;;  %1790 = vst [vmem:[#allocation2 + $0x20] sm:$0xff] %v3669_v4  ;;  %2548 = vmatpush3.bf16.msra.mxu0 %v1803_v61  ;;  %v3719_v31 = vadd.f32 %v3626_v56, %v1760_v27  ;;  %v1762_v10 = vmul.f32 %v3565_v25, %v3406_v37  ;;  %v1763_v37 = vmul.f32 %v3565_v25, %v3412_v44  ;;  %v4140_v36 = vmov 0 }
 0x75b   :  { %1791 = vst [vmem:[#allocation2 + $0x28] sm:$0xff] %v3672_v49  ;;  %1792 = vst [vmem:[#allocation2 + $0x30] sm:$0xff] %v3675_v47  ;;  %2549 = vmatprep.subr.bf16.mxu0 %v2724_v16  ;;  %v1804_v58 = vpack.c.bf16 %v1773_v7, %v1772_v62  ;;  %v1985_v25 = vadd.s32 %v1983_v52, %v3514_v26  ;;  %vm3799_vm0 = vcmp.ge.s32.totalorder %v1954_v6, %v1956_v41 }
 0x75c   :  { %1793 = vst [vmem:[#allocation2 + $0x38] sm:$0xff] %v3684_v54  ;;  %1794 = vst [vmem:[#allocation2 + $0x40] sm:$0xff] %v3687_v21  ;;  %v3756_v44 = vadd.f32 %v3626_v56, %v1762_v10  ;;  %v3772_v15 = vadd.f32 %v3626_v56, %v1763_v37  ;;  %vm3805_vm1 = vcmp.ge.s32.totalorder %v1955_v9, %v1956_v41  ;;  %v2020_v22 = vstv %s2019_s9 }
 0x75d   :  { %1795 = vst [vmem:[#allocation2 + $0x48] sm:$0xff] %v3690_v18  ;;  %1796 = vst [vmem:[#allocation2 + $0x50] sm:$0xff] %v3700_v60  ;;  %vm1961_vm3 = vcmp.lt.s32.totalorder %v1954_v6, %v1960_v43  ;;  %vm1962_vm4 = vcmp.lt.s32.totalorder %v1955_v9, %v1960_v43  ;;  %v2014_v41 = vadd.s32 %v2013_v12, %v4105_v53  ;;  %v3895_v1 = vstv %s2079_s3 }
 0x75e   :  { %1797 = vst [vmem:[#allocation2 + $0x58] sm:$0xff] %v3703_v23  ;;  %1798 = vst [vmem:[#allocation2 + $0x60] sm:$0xff] %v3719_v31  ;;  %2550 = vmatpush3.bf16.msra.mxu0 %v1804_v58  ;;  %v1805_v48 = vpack.c.bf16 %v3672_v49, %v3669_v4  ;;  %vm3847_vm7 = vcmp.ge.s32.totalorder %v1985_v25, %v1986_v13  ;;  %v2015_v30 = vadd.s32 %v2013_v12, %v3514_v26 }
 0x75f   :  { %1800 = vst [vmem:[#allocation2 + $0x70] sm:$0xff] %v3756_v44  ;;  %2551 = vmatprep.subr.bf16.mxu0 %v2724_v16  ;;  %1801 = vst [vmem:[#allocation2 + $0x78] sm:$0xff] %v3772_v15  ;;  %v2044_v13 = vadd.s32 %v2043_v38, %v4105_v53  ;;  %v3865_v19 = vadd.s32 %v2043_v38, %v3514_v26  ;;  %vm1992_vm10 = vcmp.lt.s32.totalorder %v1985_v25, %v1990_v2 }
 0x760   :  { %vm3870_vm13 = vmand %vm3799_vm0, %vm1961_vm3  ;;  %v3875_v14 = vadd.s32 %v2073_v17, %v4105_v53  ;;  %v3878_v56 = vadd.s32 %v2073_v17, %v3514_v26  ;;  %vm3890_vm0 = vcmp.ge.s32.totalorder %v2014_v41, %v2016_v28  ;;  %v2076_v53 = vstv %s3526_s10  ;;  %s2687_s10 = scalar_lea.vmem %s2117_s30, 256 }
 0x761   :  { %v4139_v50 = vsel %vm3870_vm13, 4294967295, %v4138_v50  ;;  %vm3884_vm14 = vmand %vm3805_vm1, %vm1962_vm4  ;;  %v1806_v26 = vpack.c.bf16 %v3684_v54, %v3675_v47  ;;  %vm3908_vm1 = vcmp.ge.s32.totalorder %v2015_v30, %v2016_v28  ;;  %vm2021_vm4 = vcmp.lt.s32.totalorder %v2014_v41, %v2020_v22  ;;  %p2688_p6 = scmp.ne.s32.totalorder %s2117_s30, %s2687_s10  ;;  %p2693_p8 = scmp.lt.s32.totalorder %s2687_s10, %s2687_s10 }
 0x762   :  { %2552 = vmatpush3.bf16.msra.mxu0 %v1805_v48  ;;  %v4141_v36 = vsel %vm3884_vm14, 4294967295, %v4140_v36  ;;  %vm3902_vm3 = vmand %vm3841_vm6, %vm1991_vm9  ;;  %vm2022_vm14 = vcmp.lt.s32.totalorder %v2015_v30, %v2020_v22  ;;  %vm3918_vm8 = vcmp.ge.s32.totalorder %v2044_v13, %v2046_v8  ;;  %vm3923_vm6 = vcmp.ge.s32.totalorder %v3865_v19, %v2046_v8 }
 0x763   :  { %2553 = vmatprep.subr.bf16.mxu0 %v2724_v16  ;;  %v4145_v29 = vsel %vm3902_vm3, 4294967295, %v4144_v29  ;;  %vm3914_vm13 = vmand %vm3847_vm7, %vm1992_vm10  ;;  %vm3931_vm7 = vcmp.ge.s32.totalorder %v3875_v14, %v2076_v53  ;;  %vm3936_vm10 = vcmp.ge.s32.totalorder %v3878_v56, %v2076_v53  ;;  %vm2081_vm3 = vcmp.lt.s32.totalorder %v3875_v14, %v3895_v1  ;;  %p2694_p9 = por %p2693_p8, %p2692_p7 }
 0x764   :  { %v1807_v49 = vpack.c.bf16 %v3690_v18, %v3687_v21  ;;  %v1808_v47 = vpack.c.bf16 %v3703_v23, %v3700_v60  ;;  %vm3957_vm9 = vmand %vm3890_vm0, %vm2021_vm4  ;;  %v1809_v21 = vpack.c.bf16 %v3660_v3, %v3719_v31  ;;  %v1810_v34 = vpack.c.bf16 %v3772_v15, %v3756_v44 }
 0x765   :  { %vm4168_vm0 = vcmp.lt.s32.totalorder %v3865_v19, %v2050_v45  ;;  %vm4012_vm4 = vmand %vm3931_vm7, %vm2081_vm3  ;;  %vm2096_vm3 = vcmask 1041408   ;;  %vm2098_vm7 = vcmask 1042432   ;;  %p2695_p10 = pnand %p2694_p9, %p2688_p6 }
 0x766   :  { %2554 = vmatpush3.bf16.msra.mxu0 %v1806_v26  ;;  %v1858_v59 = vld [vmem:[%s1857_s23] sm:$0xff]  ;;  %v1859_v35 = vld [vmem:[%s1857_s23 + $0x8] sm:$0xff] }
 0x767   :  { %v1891_v62 = vld [vmem:[%s1890_s25] sm:$0xff]  ;;  %2555 = vmatprep.subr.bf16.mxu0 %v2724_v16  ;;  %v1875_v61 = vsel %vm3763_vm11, %v1858_v59, -1e+30  ;;  %v1876_v54 = vsel %vm3779_vm12, %v1859_v35, -1e+30  ;;  %v1892_v51 = vld [vmem:[%s1890_s25 + $0x8] sm:$0xff]  ;;  %vm3971_vm11 = vmand %vm3908_vm1, %vm2022_vm14  ;;  %vm4162_vm12 = vnez %v4137_v57  ;;  %vm4166_vm14 = vnez %v4139_v50 }
 0x768   :  { %v1921_v28 = vld [vmem:[%s1920_s11] sm:$0xff]  ;;  %v1877_v18 = vmax.f32 %v1875_v61, %v1876_v54  ;;  %v1905_v60 = vsel %vm3793_vm15, %v1891_v62, -1e+30  ;;  %v1906_v23 = vsel %vm3820_vm2, %v1892_v51, -1e+30  ;;  %v1922_v6 = vld [vmem:[%s1920_s11 + $0x8] sm:$0xff]  ;;  %vm4163_vm15 = vcmp.lt.s32.totalorder %v2044_v13, %v2050_v45  ;;  %vm3997_vm1 = vmand %vm3923_vm6, %vm4168_vm0 }
 0x769   :  { %v1951_v9 = vld [vmem:[%s1950_s22] sm:$0xff]  ;;  %v1907_v43 = vmax.f32 %v1905_v60, %v1906_v23  ;;  %v1935_v55 = vsel %vm3835_vm5, %v1921_v28, -1e+30  ;;  %v1936_v58 = vsel %vm4162_vm12, %v1922_v6, -1e+30  ;;  %v1952_v11 = vld [vmem:[%s1950_s22 + $0x8] sm:$0xff]  ;;  %vm3985_vm2 = vmand %vm3918_vm8, %vm4163_vm15  ;;  %vm4167_vm5 = vnez %v4141_v36 }
 0x76a   :  { %v1981_v25 = vld [vmem:[%s1980_s2] sm:$0xff]  ;;  %2556 = vmatpush3.bf16.msra.mxu0 %v1807_v49  ;;  %v1878_v33 = vrot.slane %v1877_v18, 4  ;;  %v1937_v2 = vmax.f32 %v1935_v55, %v1936_v58  ;;  %v1965_v39 = vsel %vm4166_vm14, %v1951_v9, -1e+30  ;;  %v1966_v0 = vsel %vm4167_vm5, %v1952_v11, -1e+30 }
 0x76b   :  { %v1982_v52 = vld [vmem:[%s1980_s2 + $0x8] sm:$0xff]  ;;  %2557 = vmatprep.subr.bf16.mxu0 %v2724_v16  ;;  %v1908_v8 = vrot.slane %v1907_v43, 4  ;;  %v1967_v46 = vmax.f32 %v1965_v39, %v1966_v0  ;;  %vm4171_vm8 = vnez %v4145_v29  ;;  %v2011_v48 = vld [vmem:[%s2010_s26] sm:$0xff]  ;;  %vm4174_vm6 = vcmp.lt.s32.totalorder %v3878_v56, %v3895_v1 }
 0x76c   :  { %v1995_v41 = vsel %vm4171_vm8, %v1981_v25, -1e+30  ;;  %v1996_v17 = vsel %vm3914_vm13, %v1982_v52, -1e+30  ;;  %v1879_v42 = vmax.f32 %v1877_v18, %v1878_v33  ;;  %v1938_v20 = vrot.slane %v1937_v2, 4  ;;  %v2012_v57 = vld [vmem:[%s2010_s26 + $0x8] sm:$0xff] }
 0x76d   :  { %v1997_v30 = vmax.f32 %v1995_v41, %v1996_v17  ;;  %v2025_v22 = vsel %vm3957_vm9, %v2011_v48, -1e+30  ;;  %v2041_v13 = vld [vmem:[%s2040_s27] sm:$0xff]  ;;  %v2042_v19 = vld [vmem:[%s2040_s27 + $0x8] sm:$0xff]  ;;  %vm2094_vm13 = vcmask 1040384   ;;  %v1909_v50 = vmax.f32 %v1907_v43, %v1908_v8  ;;  %vm4029_vm9 = vmand %vm3936_vm10, %vm4174_vm6 }
 0x76e   :  { %v1968_v45 = vrot.slane %v1967_v46, 4  ;;  %v2026_v14 = vsel %vm3971_vm11, %v2012_v57, -1e+30  ;;  %v2055_v36 = vsel %vm3985_vm2, %v2041_v13, -1e+30  ;;  %v2071_v63 = vld [vmem:[%s2070_s6] sm:$0xff]  ;;  %2558 = vmatpush3.bf16.msra.mxu0 %v1808_v47  ;;  %v1939_v26 = vmax.f32 %v1937_v2, %v1938_v20 }
 0x76f   :  { %v1880_v53 = vrot.slane %v1879_v42, 2  ;;  %v1998_v29 = vrot.slane %v1997_v30, 4  ;;  %v2027_v32 = vmax.f32 %v2025_v22, %v2026_v14  ;;  %v2072_v24 = vld [vmem:[%s2070_s6 + $0x8] sm:$0xff]  ;;  %2559 = vmatprep.subr.bf16.mxu0 %v2724_v16  ;;  %v1910_v27 = vrot.slane %v1909_v50, 2 }
 0x770   :  { %v1969_v59 = vmax.f32 %v1967_v46, %v1968_v45  ;;  %v2056_v35 = vsel %vm3997_vm1, %v2042_v19, -1e+30  ;;  %v2085_v62 = vsel %vm4012_vm4, %v2071_v63, -1e+30  ;;  %v1940_v49 = vrot.slane %v1939_v26, 2 }
 0x771   :  { %v1881_v7 = vmax.f32 %v1879_v42, %v1880_v53  ;;  %v1999_v56 = vmax.f32 %v1997_v30, %v1998_v29  ;;  %v2028_v1 = vrot.slane %v2027_v32, 4  ;;  %v1911_v4 = vmax.f32 %v1909_v50, %v1910_v27 }
 0x772   :  { %v1970_v47 = vrot.slane %v1969_v59, 2  ;;  %v2057_v61 = vmax.f32 %v2055_v36, %v2056_v35  ;;  %v2086_v54 = vsel %vm4029_vm9, %v2072_v24, -1e+30  ;;  %2560 = vmatpush3.bf16.msra.mxu0 %v1809_v21  ;;  %v1941_v28 = vmax.f32 %v1939_v26, %v1940_v49 }
 0x773   :  { %v1882_v51 = vrot.slane %v1881_v7, 1  ;;  %v2000_v10 = vrot.slane %v1999_v56, 2  ;;  %v2029_v18 = vmax.f32 %v2027_v32, %v2028_v1  ;;  %2561 = vmatprep.subr.bf16.mxu0 %v2724_v16  ;;  %v1912_v60 = vrot.slane %v1911_v4, 1  ;;  %v1802_v16 = vld [vmem:[%s4177_s7] sm:$0xf] }
 0x774   :  { %v1971_v23 = vmax.f32 %v1969_v59, %v1970_v47  ;;  %v2058_v6 = vrot.slane %v2057_v61, 4  ;;  %v2087_v9 = vmax.f32 %v2085_v62, %v2086_v54  ;;  %v1942_v43 = vrot.slane %v1941_v28, 1 }
 0x775   :  { %v1883_v37 = vmax.f32 %v1881_v7, %v1882_v51  ;;  %v2001_v55 = vmax.f32 %v1999_v56, %v2000_v10  ;;  %v2030_v58 = vrot.slane %v2029_v18, 2  ;;  %v1913_v11 = vmax.f32 %v1911_v4, %v1912_v60 }
 0x776   :  { %v1972_v25 = vrot.slane %v1971_v23, 1  ;;  %v2059_v12 = vmax.f32 %v2057_v61, %v2058_v6  ;;  %v2088_v33 = vrot.slane %v2087_v9, 4  ;;  %2562 = vmatpush3.bf16.msra.mxu0 %v1810_v34  ;;  %v1943_v3 = vmax.f32 %v1941_v28, %v1942_v43 }
 0x777   :  { %v2002_v31 = vrot.slane %v2001_v55, 1  ;;  %v2031_v21 = vmax.f32 %v2029_v18, %v2030_v58  ;;  %vm2100_vm10 = vcmask 1043456   ;;  %v2095_v52 = vsel %vm2094_vm13, %v1883_v37, %v1913_v11 }
 0x778   :  { %v1973_v2 = vmax.f32 %v1971_v23, %v1972_v25  ;;  %v2060_v39 = vrot.slane %v2059_v12, 2  ;;  %v2089_v0 = vmax.f32 %v2087_v9, %v2088_v33  ;;  %v2097_v46 = vsel %vm2096_vm3, %v2095_v52, %v1943_v3 }
 0x779   :  { %v2003_v38 = vmax.f32 %v2001_v55, %v2002_v31  ;;  %v2032_v8 = vrot.slane %v2031_v21, 1  ;;  %2564 = vmatmul.mubr.bf16.vlgmr.msra.gmra.mrb[48].mxu0 %v1802_v16  ;;  %vm2102_vm11 = vcmask 1044480   ;;  %vm2104_vm12 = vcmask 1045504  }
 0x77a   :  { %v2061_v44 = vmax.f32 %v2059_v12, %v2060_v39  ;;  %v2090_v15 = vrot.slane %v2089_v0, 2  ;;  %v2099_v34 = vsel %vm2098_vm7, %v2097_v46, %v1973_v2  ;;  %vm2106_vm15 = vcmask 1046528  }
 0x77b   :  { %v2033_v41 = vmax.f32 %v2031_v21, %v2032_v8  ;;  %v2101_v17 = vsel %vm2100_vm10, %v2099_v34, %v2003_v38 }
 0x77c   :  { %v2062_v48 = vrot.slane %v2061_v44, 1  ;;  %v2091_v40 = vmax.f32 %v2089_v0, %v2090_v15 }
 0x77d   :  { %v2103_v42 = vsel %vm2102_vm11, %v2101_v17, %v2033_v41 }
 0x77e   :  { %v2063_v20 = vmax.f32 %v2061_v44, %v2062_v48  ;;  %v2092_v30 = vrot.slane %v2091_v40, 1 }
 0x780   :  { %v2093_v57 = vmax.f32 %v2091_v40, %v2092_v30  ;;  %v2105_v22 = vsel %vm2104_vm12, %v2103_v42, %v2063_v20 }
 0x782   :  { %v2107_v13 = vsel %vm2106_vm15, %v2105_v22, %v2093_v57 }
 0x783   :  { %2109 = vst [vmem:[#allocation10 + $0x8] sm:$0xff] %v2107_v13 }
 0x84c   :  { %v1845_v19 = vpop.f32.mrb[48].mxu0 }
 0x84d   :  { %2108 = vst [vmem:[#allocation10] sm:$0xff] %v1845_v19  ;;  %v2565_v50 = vpop.f32.mrb[49].mxu0 }
 0x84e   :  { %v1848_v45 = vpop.f32.mrb[50].mxu0 }
 0x84f   :  { %2698 = shalt.err (!%p2695_p10)
}
 0x850   :  { %s2699_s8 = scalar_lea.hbm %s4085_s20, 256 }
 0x851   :  { %p2700_p11 = scmp.ne.s32.totalorder %s4085_s20, %s2699_s8  ;;  %p2703_p12 = scmp.lt.u32.totalorder %s2699_s8, %s4085_s20 }
 0x853   :  { %p2705_p13 = pnand %p2703_p12, %p2700_p11 }
 0x855   :  { %2708 = shalt.err (!%p2705_p13)
}
 0x856   :  { %2119 = dma.vmem_to_hbm [thread:$0]  %s2117_s30, 256, %s4085_s20, [#allocation5]   ;;  %v2566_v14 = vpop.f32.mrb[51].mxu0 }
 0x857   :  { %2715 = dma.done.wait [#allocation5], 256  }
 0x858   :  { %2716 = vsyncadd [#allocation5], 4294967040 }
 0x859   :  { %2123 = vsyncpa [#allocation4], 1 }
 0x85a   :  { %2124 = vsyncpa [#allocation5], 1 }
 0x85b   :  { %2125 = vsyncpa [#allocation6], 1 }
 0x85c   :  { %2126 = vsyncpa [#allocation8], 1 }

</bundles_post_ra>
